<compile_context>
chip_gen: v6e
topology: v6e:2x2x1
jax: 0.10.0
libtpu: 0.0.40
codegen_flags: <defaults>
</compile_context>

<pallas_src>
import math
import functools

import numpy as np
import jax
import jax.numpy as jnp
from jax import lax
from jax.experimental import pallas as pl
from jax.experimental.pallas import tpu as pltpu


def _attention_core(heads, head_dim, out_dtype, bias,
                    q_ref, k_ref, v_ref,
                    wq_ref, wk_ref, wv_ref, wo_ref, bo_ref,
                    o_ref, acc_ref):
    """Shared body. q_ref: (1, TQ, E); k_ref/v_ref: (1, Lk, E); wq/wk/wv: (Dh, Dh) bf16
    (scale folded into wq); wo_ref: (heads, Dh, E) bf16 = fc_out.weight.T split by head
    rows; bo_ref: (1, E) f32; acc_ref: (TQ, E) f32 VMEM scratch; bias: None or (TQ, Lk)
    additive f32 mask bias."""
    q = q_ref[0]                                   # (TQ, E)
    k = k_ref[0]                                   # (Lk, E)
    v = v_ref[0]                                   # (Lk, E)

    # fc_out bias is the accumulator's initial value (saves a final add pass).
    acc_ref[...] = jnp.broadcast_to(bo_ref[...], acc_ref.shape)

    for h in range(heads):                         # heads is small; static unroll
        sl = slice(h * head_dim, (h + 1) * head_dim)

        # Shared per-head projections (Dh, Dh); 1/sqrt(embed_size) folded into wq.
        qh = jnp.dot(q[:, sl].astype(jnp.bfloat16), wq_ref[...],
                     preferred_element_type=jnp.float32)          # (TQ, Dh)
        kh = jnp.dot(k[:, sl].astype(jnp.bfloat16), wk_ref[...],
                     preferred_element_type=jnp.float32)          # (Lk, Dh)
        vh = jnp.dot(v[:, sl].astype(jnp.bfloat16), wv_ref[...],
                     preferred_element_type=jnp.float32)          # (Lk, Dh)

        # scores = qh @ kh^T (contract head_dim), bf16 operands, f32 accumulate.
        s = lax.dot_general(qh.astype(jnp.bfloat16), kh.astype(jnp.bfloat16),
                            (((1,), (1,)), ((), ())),
                            preferred_element_type=jnp.float32)   # (TQ, Lk)
        if bias is not None:
            s = s + bias                                          # -inf on masked keys

        # Softmax: normalize after the PV matmul (fully-masked rows give NaN, same as
        # PyTorch masked_fill(-inf) + softmax).
        m = jnp.max(s, axis=-1, keepdims=True)
        e = jnp.exp(s - m)                                        # unnormalized probs
        denom = jnp.sum(e, axis=-1, keepdims=True)                # (TQ, 1)
        ctx_h = jnp.dot(e.astype(jnp.bfloat16), vh.astype(jnp.bfloat16),
                        preferred_element_type=jnp.float32)       # (TQ, Dh)
        ctx_h = ctx_h * pl.reciprocal(denom, approx=True)

        # fc_out(concat_h ctx_h) == sum_h ctx_h @ W_o^T[h*Dh:(h+1)*Dh, :]
        acc_ref[...] += jnp.dot(ctx_h.astype(jnp.bfloat16), wo_ref[h],
                                preferred_element_type=jnp.float32)

    o_ref[0] = acc_ref[...].astype(out_dtype)


def _mhsa_kernel_nomask(heads, head_dim, out_dtype,
                        q_ref, k_ref, v_ref,
                        wq_ref, wk_ref, wv_ref, wo_ref, bo_ref,
                        o_ref, acc_ref):
    _attention_core(heads, head_dim, out_dtype, None,
                    q_ref, k_ref, v_ref, wq_ref, wk_ref, wv_ref, wo_ref, bo_ref,
                    o_ref, acc_ref)


def _mhsa_kernel_masked(heads, head_dim, out_dtype,
                        q_ref, k_ref, v_ref, mask_ref,
                        wq_ref, wk_ref, wv_ref, wo_ref, bo_ref,
                        o_ref, acc_ref):
    # int8 {0,1} mask -> single additive bias, computed once (hoisted out of head loop).
    mvalid = mask_ref[0].astype(jnp.float32)                       # (TQ, Lk)
    bias = jnp.where(mvalid == 0.0, jnp.float32(-jnp.inf), jnp.float32(0.0))
    _attention_core(heads, head_dim, out_dtype, bias,
                    q_ref, k_ref, v_ref, wq_ref, wk_ref, wv_ref, wo_ref, bo_ref,
                    o_ref, acc_ref)


def _pick_q_tile(lq: int) -> int:
    for t in (512, 256, 128):
        if lq % t == 0:
            return t
    return lq            # short / ragged sequences: single tile


@functools.partial(jax.jit, static_argnames=("heads",))
def _mhsa_pallas(queries, keys, values, mask_i8, wq_t, wk_t, wv_t, wo_heads, bo, *, heads):
    N, Lq, E = queries.shape
    Lk = keys.shape[1]
    Dh = E // heads
    out_dtype = queries.dtype
    TQ = _pick_q_tile(Lq)
    n_qt = Lq // TQ
    has_mask = mask_i8 is not None

    kernel = functools.partial(
        _mhsa_kernel_masked if has_mask else _mhsa_kernel_nomask, heads, Dh, out_dtype)

    in_specs = [
        pl.BlockSpec((1, TQ, E), lambda n, t: (n, t, 0)),     # queries (q-tiled stream)
        pl.BlockSpec((1, Lk, E), lambda n, t: (n, 0, 0)),     # keys   (resident over q tiles)
        pl.BlockSpec((1, Lk, E), lambda n, t: (n, 0, 0)),     # values (resident over q tiles)
    ]
    args = [queries, keys, values]
    if has_mask:
        in_specs.append(pl.BlockSpec((1, TQ, Lk), lambda n, t: (n, t, 0)))   # int8 mask
        args.append(mask_i8)
    in_specs += [
        pl.BlockSpec((Dh, Dh), lambda n, t: (0, 0)),          # wq (scale folded, bf16)
        pl.BlockSpec((Dh, Dh), lambda n, t: (0, 0)),          # wk
        pl.BlockSpec((Dh, Dh), lambda n, t: (0, 0)),          # wv
        pl.BlockSpec((heads, Dh, E), lambda n, t: (0, 0, 0)), # fc_out.weight.T per head
        pl.BlockSpec((1, E), lambda n, t: (0, 0)),            # fc_out.bias
    ]
    args += [wq_t, wk_t, wv_t, wo_heads, bo]

    # VMEM budget derived from the chosen tiles (double-buffered streamed blocks).
    in_b = jnp.dtype(queries.dtype).itemsize
    out_b = jnp.dtype(out_dtype).itemsize
    work = (2 * TQ * E * in_b                      # q block
            + 2 * 2 * Lk * E * in_b                # k + v blocks
            + 2 * TQ * E * out_b                   # output block
            + (2 * TQ * Lk if has_mask else 0)     # int8 mask block
            + 2 * (3 * Dh * Dh + heads * Dh * E) * 2   # bf16 weights
            + 2 * E * 4                            # bias
            + TQ * E * 4)                          # accumulator scratch
    vmem_limit = int(min(64 * 1024 * 1024, max(32 * 1024 * 1024, 4 * work)))

    # Advisory cost estimate for XLA's scheduler.
    flops_per_sample = (2 * E * Dh * (Lq + 2 * Lk)     # per-head q/k/v projections
                        + 4 * Lq * Lk * E              # scores + PV matmuls
                        + 2 * Lq * E * E)              # fc_out
    bytes_accessed = (N * (Lq + 2 * Lk) * E * in_b
                      + (N * Lq * Lk if has_mask else 0)
                      + (3 * Dh * Dh + heads * Dh * E) * 2 + E * 4
                      + N * Lq * E * out_b)

    grid_spec = pltpu.PrefetchScalarGridSpec(
        num_scalar_prefetch=0,
        grid=(N, n_qt),
        in_specs=in_specs,
        out_specs=pl.BlockSpec((1, TQ, E), lambda n, t: (n, t, 0)),
        scratch_shapes=[pltpu.VMEM((TQ, E), jnp.float32)],
    )

    return pl.pallas_call(
        kernel,
        out_shape=jax.ShapeDtypeStruct((N, Lq, E), out_dtype),
        grid_spec=grid_spec,
        compiler_params=pltpu.CompilerParams(
            dimension_semantics=("parallel", "parallel"),
            vmem_limit_bytes=vmem_limit),
        cost_estimate=pl.CostEstimate(
            flops=int(N * flops_per_sample),
            transcendentals=int(N * heads * Lq * Lk),
            bytes_accessed=int(bytes_accessed)),
    )(*args)


def multihead_self_attention(values, keys, queries, mask, params, *, embed_size, heads):
    """params = (wq, wk, wv, w_fc, b_fc) in PyTorch layout:
    wq/wk/wv: (head_dim, head_dim) bias-free Linear weights (y = x @ W.T),
    w_fc: (embed_size, embed_size), b_fc: (embed_size,)."""
    assert embed_size % heads == 0
    head_dim = embed_size // heads
    wq, wk, wv, w_fc, b_fc = params
    N, Lq, _ = queries.shape
    Lk = keys.shape[1]

    # Exact host-side folds: transpose to (in, out) layout for x @ W.T and fold the
    # 1/sqrt(embed_size) score scale into the query weight.  Weights go to bf16 (MXU).
    scale = 1.0 / math.sqrt(embed_size)
    wq_t = (jnp.asarray(wq, jnp.float32).T * jnp.float32(scale)).astype(jnp.bfloat16)
    wk_t = jnp.asarray(wk, jnp.float32).T.astype(jnp.bfloat16)
    wv_t = jnp.asarray(wv, jnp.float32).T.astype(jnp.bfloat16)
    wo_heads = jnp.asarray(w_fc, jnp.float32).T.reshape(
        heads, head_dim, embed_size).astype(jnp.bfloat16)     # fc_out.weight.T by head rows
    bo = jnp.asarray(b_fc, jnp.float32).reshape(1, embed_size)

    if mask is None:
        mask_i8 = None                                        # maskless kernel variant
    else:
        m = jnp.asarray(mask)
        if m.ndim == 4:
            if m.shape[1] != 1:
                # TODO(synk): per-head (N, heads, Lq, Lk) masks are not plumbed in;
                # only head-shared masks broadcastable to (N, Lq, Lk) are supported.
                raise NotImplementedError("per-head attention masks are not supported")
            m = m[:, 0]
        m = jnp.broadcast_to(m, (N, Lq, Lk))                  # broadcast BEFORE any reshape
        mask_i8 = (m != 0).astype(jnp.int8)                   # exact 0/1, 1 byte/element

    return _mhsa_pallas(queries, keys, values, mask_i8,
                        wq_t, wk_t, wv_t, wo_heads, bo, heads=heads)


def _mhsa_reference(values, keys, queries, mask, wq, wk, wv, w_fc, b_fc, *, heads):
    """Pure-JAX transcription of the PyTorch forward (correctness oracle, f32)."""
    N, Lq, E = queries.shape
    Dh = E // heads
    q4 = queries.reshape(N, -1, heads, Dh) @ wq.T
    k4 = keys.reshape(N, -1, heads, Dh) @ wk.T
    v4 = values.reshape(N, -1, heads, Dh) @ wv.T
    att = jnp.einsum('nqhd,nkhd->nhqk', q4, k4) / (E ** 0.5)
    if mask is not None:
        att = jnp.where(mask == 0, -jnp.inf, att)
    att = jax.nn.softmax(att, axis=3)
    out = jnp.einsum('nhql,nlhd->nqhd', att, v4).reshape(N, Lq, E)
    return out @ w_fc.T + b_fc


if __name__ == "__main__":
    EMBED = 32
    HEADS = 4
    HEAD_DIM = EMBED // HEADS
    BATCH = 2
    SEQ = 8

    key = jax.random.PRNGKey(0)
    kq, kk, kv, kwq, kwk, kwv, kwo, kbo = jax.random.split(key, 8)

    queries = jax.random.normal(kq, (BATCH, SEQ, EMBED), jnp.float32)
    keys_in = jax.random.normal(kk, (BATCH, SEQ, EMBED), jnp.float32)
    values = jax.random.normal(kv, (BATCH, SEQ, EMBED), jnp.float32)

    std = 0.125
    wq = std * jax.random.normal(kwq, (HEAD_DIM, HEAD_DIM), jnp.float32)
    wk = std * jax.random.normal(kwk, (HEAD_DIM, HEAD_DIM), jnp.float32)
    wv = std * jax.random.normal(kwv, (HEAD_DIM, HEAD_DIM), jnp.float32)
    w_fc = std * jax.random.normal(kwo, (EMBED, EMBED), jnp.float32)
    b_fc = 0.1 * jax.random.normal(kbo, (EMBED,), jnp.float32)
    params = (wq, wk, wv, w_fc, b_fc)

    # --- maskless path (no dense mask materialized or streamed) ---
    out = multihead_self_attention(values, keys_in, queries, None, params,
                                   embed_size=EMBED, heads=HEADS)
    jax.block_until_ready(out)
    assert out.shape == (BATCH, SEQ, EMBED), out.shape
    ref = _mhsa_reference(values, keys_in, queries, None,
                          wq, wk, wv, w_fc, b_fc, heads=HEADS)
    np.testing.assert_allclose(np.asarray(out), np.asarray(ref), rtol=2e-2, atol=2e-2)
    assert bool(jnp.all(jnp.isfinite(out)))

    # --- masked path (PyTorch-style head-shared (N, 1, Lq, Lk) mask, streamed as int8) ---
    causal = jnp.tril(jnp.ones((SEQ, SEQ), jnp.float32))
    mask = jnp.broadcast_to(causal[None, None], (BATCH, 1, SEQ, SEQ))
    out_m = multihead_self_attention(values, keys_in, queries, mask, params,
                                     embed_size=EMBED, heads=HEADS)
    jax.block_until_ready(out_m)
    ref_m = _mhsa_reference(values, keys_in, queries, mask,
                            wq, wk, wv, w_fc, b_fc, heads=HEADS)
    np.testing.assert_allclose(np.asarray(out_m), np.asarray(ref_m), rtol=2e-2, atol=2e-2)
    assert bool(jnp.all(jnp.isfinite(out_m)))

    print("KERNEL_OK")
</pallas_src>

<mosaic_0001>
module attributes {stable_mosaic.version = 11 : i64} {
  func.func @_mhsa_kernel_nomask(%arg0: i32, %arg1: i32, %arg2: memref<1x8x32xf32, #tpu.memory_space<vmem>>, %arg3: memref<1x8x32xf32, #tpu.memory_space<vmem>>, %arg4: memref<1x8x32xf32, #tpu.memory_space<vmem>>, %arg5: memref<8x8xbf16, #tpu.memory_space<vmem>>, %arg6: memref<8x8xbf16, #tpu.memory_space<vmem>>, %arg7: memref<8x8xbf16, #tpu.memory_space<vmem>>, %arg8: memref<4x8x32xbf16, #tpu.memory_space<vmem>>, %arg9: memref<1x32xf32, #tpu.memory_space<vmem>>, %arg10: memref<1x8x32xf32, #tpu.memory_space<vmem>>, %arg11: memref<8x32xf32, #tpu.memory_space<vmem>>) attributes {dimension_semantics = [#tpu.dimension_semantics<parallel>, #tpu.dimension_semantics<parallel>], iteration_bounds = array<i64: 2, 1>, scalar_prefetch = 0 : i64, scratch_operands = 1 : i64, tpu.core_type = #tpu.core_type<tc>, window_params = [{transform_indices = @transform_0, window_bounds = array<i64: 1, 8, 32>}, {transform_indices = @transform_1, window_bounds = array<i64: 1, 8, 32>}, {transform_indices = @transform_2, window_bounds = array<i64: 1, 8, 32>}, {pipeline_mode = #tpu.pipeline_mode<synchronous>, transform_indices = @transform_3, window_bounds = array<i64: 8, 8>}, {pipeline_mode = #tpu.pipeline_mode<synchronous>, transform_indices = @transform_4, window_bounds = array<i64: 8, 8>}, {pipeline_mode = #tpu.pipeline_mode<synchronous>, transform_indices = @transform_5, window_bounds = array<i64: 8, 8>}, {pipeline_mode = #tpu.pipeline_mode<synchronous>, transform_indices = @transform_6, window_bounds = array<i64: 4, 8, 32>}, {pipeline_mode = #tpu.pipeline_mode<synchronous>, transform_indices = @transform_7, window_bounds = array<i64: 1, 32>}, {transform_indices = @transform_8, window_bounds = array<i64: 1, 8, 32>}]} {
    %c0 = arith.constant 0 : index
    %c0_0 = arith.constant 0 : index
    %c0_1 = arith.constant 0 : index
    %0 = vector.load %arg2[%c0, %c0_0, %c0_1] : memref<1x8x32xf32, #tpu.memory_space<vmem>>, vector<1x8x32xf32>
    %1 = vector.shape_cast %0 : vector<1x8x32xf32> to vector<8x32xf32>
    %c0_2 = arith.constant 0 : index
    %c0_3 = arith.constant 0 : index
    %c0_4 = arith.constant 0 : index
    %2 = vector.load %arg3[%c0_2, %c0_3, %c0_4] : memref<1x8x32xf32, #tpu.memory_space<vmem>>, vector<1x8x32xf32>
    %3 = vector.shape_cast %2 : vector<1x8x32xf32> to vector<8x32xf32>
    %c0_5 = arith.constant 0 : index
    %c0_6 = arith.constant 0 : index
    %c0_7 = arith.constant 0 : index
    %4 = vector.load %arg4[%c0_5, %c0_6, %c0_7] : memref<1x8x32xf32, #tpu.memory_space<vmem>>, vector<1x8x32xf32>
    %5 = vector.shape_cast %4 : vector<1x8x32xf32> to vector<8x32xf32>
    %c0_8 = arith.constant 0 : index
    %c0_9 = arith.constant 0 : index
    %6 = vector.load %arg9[%c0_8, %c0_9] : memref<1x32xf32, #tpu.memory_space<vmem>>, vector<1x32xf32>
    %7 = vector.shape_cast %6 : vector<1x32xf32> to vector<1x32xf32>
    %8 = vector.broadcast %7 : vector<1x32xf32> to vector<8x32xf32>
    %c0_10 = arith.constant 0 : index
    %c0_11 = arith.constant 0 : index
    %9 = vector.load %arg11[%c0_10, %c0_11] : memref<8x32xf32, #tpu.memory_space<vmem>>, vector<8x32xf32>
    tpu.vector_store %arg11[%c0_10, %c0_11], %8 {strides = array<i32>} : memref<8x32xf32, #tpu.memory_space<vmem>>, vector<8x32xf32>,
    %10 = vector.extract_strided_slice %1 {offsets = [0, 0], sizes = [8, 8], strides = [1, 1]} : vector<8x32xf32> to vector<8x8xf32>
    %11 = arith.truncf %10 : vector<8x8xf32> to vector<8x8xbf16>
    %c0_12 = arith.constant 0 : index
    %c0_13 = arith.constant 0 : index
    %12 = vector.load %arg5[%c0_12, %c0_13] : memref<8x8xbf16, #tpu.memory_space<vmem>>, vector<8x8xbf16>
    %cst = arith.constant dense<0.000000e+00> : vector<8x8xf32>
    %13 = tpu.matmul %11, %12, %cst {dimension_numbers = #tpu.dot_dimension_numbers<[1], [0], [0], [1], [0, 0, 1, 1], [], []>} : vector<8x8xbf16>, vector<8x8xbf16>, vector<8x8xf32> -> vector<8x8xf32>
    %14 = vector.extract_strided_slice %3 {offsets = [0, 0], sizes = [8, 8], strides = [1, 1]} : vector<8x32xf32> to vector<8x8xf32>
    %15 = arith.truncf %14 : vector<8x8xf32> to vector<8x8xbf16>
    %c0_14 = arith.constant 0 : index
    %c0_15 = arith.constant 0 : index
    %16 = vector.load %arg6[%c0_14, %c0_15] : memref<8x8xbf16, #tpu.memory_space<vmem>>, vector<8x8xbf16>
    %cst_16 = arith.constant dense<0.000000e+00> : vector<8x8xf32>
    %17 = tpu.matmul %15, %16, %cst_16 {dimension_numbers = #tpu.dot_dimension_numbers<[1], [0], [0], [1], [0, 0, 1, 1], [], []>} : vector<8x8xbf16>, vector<8x8xbf16>, vector<8x8xf32> -> vector<8x8xf32>
    %18 = vector.extract_strided_slice %5 {offsets = [0, 0], sizes = [8, 8], strides = [1, 1]} : vector<8x32xf32> to vector<8x8xf32>
    %19 = arith.truncf %18 : vector<8x8xf32> to vector<8x8xbf16>
    %c0_17 = arith.constant 0 : index
    %c0_18 = arith.constant 0 : index
    %20 = vector.load %arg7[%c0_17, %c0_18] : memref<8x8xbf16, #tpu.memory_space<vmem>>, vector<8x8xbf16>
    %cst_19 = arith.constant dense<0.000000e+00> : vector<8x8xf32>
    %21 = tpu.matmul %19, %20, %cst_19 {dimension_numbers = #tpu.dot_dimension_numbers<[1], [0], [0], [1], [0, 0, 1, 1], [], []>} : vector<8x8xbf16>, vector<8x8xbf16>, vector<8x8xf32> -> vector<8x8xf32>
    %22 = arith.truncf %13 : vector<8x8xf32> to vector<8x8xbf16>
    %23 = arith.truncf %17 : vector<8x8xf32> to vector<8x8xbf16>
    %cst_20 = arith.constant dense<0.000000e+00> : vector<8x8xf32>
    %24 = tpu.matmul %22, %23, %cst_20 {dimension_numbers = #tpu.dot_dimension_numbers<[1], [1], [0], [0], [0, 0, 1, 0], [], []>} : vector<8x8xbf16>, vector<8x8xbf16>, vector<8x8xf32> -> vector<8x8xf32>
    %cst_21 = arith.constant dense<0xFF800000> : vector<8xf32>
    %25 = vector.multi_reduction <maximumf>, %24, %cst_21 [1] : vector<8x8xf32> to vector<8xf32>
    %26 = vector.shape_cast %25 : vector<8xf32> to vector<8x1xf32>
    %27 = vector.broadcast %26 : vector<8x1xf32> to vector<8x8xf32>
    %28 = arith.subf %24, %27 : vector<8x8xf32>
    %29 = math.exp %28 : vector<8x8xf32>
    %cst_22 = arith.constant dense<0.000000e+00> : vector<8xf32>
    %30 = vector.multi_reduction <add>, %29, %cst_22 [1] : vector<8x8xf32> to vector<8xf32>
    %31 = vector.shape_cast %30 : vector<8xf32> to vector<8x1xf32>
    %32 = arith.truncf %29 : vector<8x8xf32> to vector<8x8xbf16>
    %33 = arith.truncf %21 : vector<8x8xf32> to vector<8x8xbf16>
    %cst_23 = arith.constant dense<0.000000e+00> : vector<8x8xf32>
    %34 = tpu.matmul %32, %33, %cst_23 {dimension_numbers = #tpu.dot_dimension_numbers<[1], [0], [0], [1], [0, 0, 1, 1], [], []>} : vector<8x8xbf16>, vector<8x8xbf16>, vector<8x8xf32> -> vector<8x8xf32>
    %35 = tpu.reciprocal %31 {approx = true} : vector<8x1xf32> -> vector<8x1xf32>
    %36 = vector.broadcast %35 : vector<8x1xf32> to vector<8x8xf32>
    %37 = arith.mulf %34, %36 : vector<8x8xf32>
    %c0_24 = arith.constant 0 : index
    %c0_25 = arith.constant 0 : index
    %38 = vector.load %arg11[%c0_24, %c0_25] : memref<8x32xf32, #tpu.memory_space<vmem>>, vector<8x32xf32>
    %39 = arith.truncf %37 : vector<8x8xf32> to vector<8x8xbf16>
    %c0_26 = arith.constant 0 : index
    %c0_27 = arith.constant 0 : index
    %c0_28 = arith.constant 0 : index
    %40 = vector.load %arg8[%c0_26, %c0_27, %c0_28] : memref<4x8x32xbf16, #tpu.memory_space<vmem>>, vector<1x8x32xbf16>
    %41 = vector.shape_cast %40 : vector<1x8x32xbf16> to vector<8x32xbf16>
    %cst_29 = arith.constant dense<0.000000e+00> : vector<8x32xf32>
    %42 = tpu.matmul %39, %41, %cst_29 {dimension_numbers = #tpu.dot_dimension_numbers<[1], [0], [0], [1], [0, 0, 1, 1], [], []>} : vector<8x8xbf16>, vector<8x32xbf16>, vector<8x32xf32> -> vector<8x32xf32>
    %43 = arith.addf %38, %42 : vector<8x32xf32>
    %c0_30 = arith.constant 0 : index
    %c0_31 = arith.constant 0 : index
    %44 = vector.load %arg11[%c0_30, %c0_31] : memref<8x32xf32, #tpu.memory_space<vmem>>, vector<8x32xf32>
    tpu.vector_store %arg11[%c0_30, %c0_31], %43 {strides = array<i32>} : memref<8x32xf32, #tpu.memory_space<vmem>>, vector<8x32xf32>,
    %45 = vector.extract_strided_slice %1 {offsets = [0, 8], sizes = [8, 8], strides = [1, 1]} : vector<8x32xf32> to vector<8x8xf32>
    %46 = arith.truncf %45 : vector<8x8xf32> to vector<8x8xbf16>
    %c0_32 = arith.constant 0 : index
    %c0_33 = arith.constant 0 : index
    %47 = vector.load %arg5[%c0_32, %c0_33] : memref<8x8xbf16, #tpu.memory_space<vmem>>, vector<8x8xbf16>
    %cst_34 = arith.constant dense<0.000000e+00> : vector<8x8xf32>
    %48 = tpu.matmul %46, %47, %cst_34 {dimension_numbers = #tpu.dot_dimension_numbers<[1], [0], [0], [1], [0, 0, 1, 1], [], []>} : vector<8x8xbf16>, vector<8x8xbf16>, vector<8x8xf32> -> vector<8x8xf32>
    %49 = vector.extract_strided_slice %3 {offsets = [0, 8], sizes = [8, 8], strides = [1, 1]} : vector<8x32xf32> to vector<8x8xf32>
    %50 = arith.truncf %49 : vector<8x8xf32> to vector<8x8xbf16>
    %c0_35 = arith.constant 0 : index
    %c0_36 = arith.constant 0 : index
    %51 = vector.load %arg6[%c0_35, %c0_36] : memref<8x8xbf16, #tpu.memory_space<vmem>>, vector<8x8xbf16>
    %cst_37 = arith.constant dense<0.000000e+00> : vector<8x8xf32>
    %52 = tpu.matmul %50, %51, %cst_37 {dimension_numbers = #tpu.dot_dimension_numbers<[1], [0], [0], [1], [0, 0, 1, 1], [], []>} : vector<8x8xbf16>, vector<8x8xbf16>, vector<8x8xf32> -> vector<8x8xf32>
    %53 = vector.extract_strided_slice %5 {offsets = [0, 8], sizes = [8, 8], strides = [1, 1]} : vector<8x32xf32> to vector<8x8xf32>
    %54 = arith.truncf %53 : vector<8x8xf32> to vector<8x8xbf16>
    %c0_38 = arith.constant 0 : index
    %c0_39 = arith.constant 0 : index
    %55 = vector.load %arg7[%c0_38, %c0_39] : memref<8x8xbf16, #tpu.memory_space<vmem>>, vector<8x8xbf16>
    %cst_40 = arith.constant dense<0.000000e+00> : vector<8x8xf32>
    %56 = tpu.matmul %54, %55, %cst_40 {dimension_numbers = #tpu.dot_dimension_numbers<[1], [0], [0], [1], [0, 0, 1, 1], [], []>} : vector<8x8xbf16>, vector<8x8xbf16>, vector<8x8xf32> -> vector<8x8xf32>
    %57 = arith.truncf %48 : vector<8x8xf32> to vector<8x8xbf16>
    %58 = arith.truncf %52 : vector<8x8xf32> to vector<8x8xbf16>
    %cst_41 = arith.constant dense<0.000000e+00> : vector<8x8xf32>
    %59 = tpu.matmul %57, %58, %cst_41 {dimension_numbers = #tpu.dot_dimension_numbers<[1], [1], [0], [0], [0, 0, 1, 0], [], []>} : vector<8x8xbf16>, vector<8x8xbf16>, vector<8x8xf32> -> vector<8x8xf32>
    %cst_42 = arith.constant dense<0xFF800000> : vector<8xf32>
    %60 = vector.multi_reduction <maximumf>, %59, %cst_42 [1] : vector<8x8xf32> to vector<8xf32>
    %61 = vector.shape_cast %60 : vector<8xf32> to vector<8x1xf32>
    %62 = vector.broadcast %61 : vector<8x1xf32> to vector<8x8xf32>
    %63 = arith.subf %59, %62 : vector<8x8xf32>
    %64 = math.exp %63 : vector<8x8xf32>
    %cst_43 = arith.constant dense<0.000000e+00> : vector<8xf32>
    %65 = vector.multi_reduction <add>, %64, %cst_43 [1] : vector<8x8xf32> to vector<8xf32>
    %66 = vector.shape_cast %65 : vector<8xf32> to vector<8x1xf32>
    %67 = arith.truncf %64 : vector<8x8xf32> to vector<8x8xbf16>
    %68 = arith.truncf %56 : vector<8x8xf32> to vector<8x8xbf16>
    %cst_44 = arith.constant dense<0.000000e+00> : vector<8x8xf32>
    %69 = tpu.matmul %67, %68, %cst_44 {dimension_numbers = #tpu.dot_dimension_numbers<[1], [0], [0], [1], [0, 0, 1, 1], [], []>} : vector<8x8xbf16>, vector<8x8xbf16>, vector<8x8xf32> -> vector<8x8xf32>
    %70 = tpu.reciprocal %66 {approx = true} : vector<8x1xf32> -> vector<8x1xf32>
    %71 = vector.broadcast %70 : vector<8x1xf32> to vector<8x8xf32>
    %72 = arith.mulf %69, %71 : vector<8x8xf32>
    %c0_45 = arith.constant 0 : index
    %c0_46 = arith.constant 0 : index
    %73 = vector.load %arg11[%c0_45, %c0_46] : memref<8x32xf32, #tpu.memory_space<vmem>>, vector<8x32xf32>
    %74 = arith.truncf %72 : vector<8x8xf32> to vector<8x8xbf16>
    %c1 = arith.constant 1 : index
    %c0_47 = arith.constant 0 : index
    %c0_48 = arith.constant 0 : index
    %75 = vector.load %arg8[%c1, %c0_47, %c0_48] : memref<4x8x32xbf16, #tpu.memory_space<vmem>>, vector<1x8x32xbf16>
    %76 = vector.shape_cast %75 : vector<1x8x32xbf16> to vector<8x32xbf16>
    %cst_49 = arith.constant dense<0.000000e+00> : vector<8x32xf32>
    %77 = tpu.matmul %74, %76, %cst_49 {dimension_numbers = #tpu.dot_dimension_numbers<[1], [0], [0], [1], [0, 0, 1, 1], [], []>} : vector<8x8xbf16>, vector<8x32xbf16>, vector<8x32xf32> -> vector<8x32xf32>
    %78 = arith.addf %73, %77 : vector<8x32xf32>
    %c0_50 = arith.constant 0 : index
    %c0_51 = arith.constant 0 : index
    %79 = vector.load %arg11[%c0_50, %c0_51] : memref<8x32xf32, #tpu.memory_space<vmem>>, vector<8x32xf32>
    tpu.vector_store %arg11[%c0_50, %c0_51], %78 {strides = array<i32>} : memref<8x32xf32, #tpu.memory_space<vmem>>, vector<8x32xf32>,
    %80 = vector.extract_strided_slice %1 {offsets = [0, 16], sizes = [8, 8], strides = [1, 1]} : vector<8x32xf32> to vector<8x8xf32>
    %81 = arith.truncf %80 : vector<8x8xf32> to vector<8x8xbf16>
    %c0_52 = arith.constant 0 : index
    %c0_53 = arith.constant 0 : index
    %82 = vector.load %arg5[%c0_52, %c0_53] : memref<8x8xbf16, #tpu.memory_space<vmem>>, vector<8x8xbf16>
    %cst_54 = arith.constant dense<0.000000e+00> : vector<8x8xf32>
    %83 = tpu.matmul %81, %82, %cst_54 {dimension_numbers = #tpu.dot_dimension_numbers<[1], [0], [0], [1], [0, 0, 1, 1], [], []>} : vector<8x8xbf16>, vector<8x8xbf16>, vector<8x8xf32> -> vector<8x8xf32>
    %84 = vector.extract_strided_slice %3 {offsets = [0, 16], sizes = [8, 8], strides = [1, 1]} : vector<8x32xf32> to vector<8x8xf32>
    %85 = arith.truncf %84 : vector<8x8xf32> to vector<8x8xbf16>
    %c0_55 = arith.constant 0 : index
    %c0_56 = arith.constant 0 : index
    %86 = vector.load %arg6[%c0_55, %c0_56] : memref<8x8xbf16, #tpu.memory_space<vmem>>, vector<8x8xbf16>
    %cst_57 = arith.constant dense<0.000000e+00> : vector<8x8xf32>
    %87 = tpu.matmul %85, %86, %cst_57 {dimension_numbers = #tpu.dot_dimension_numbers<[1], [0], [0], [1], [0, 0, 1, 1], [], []>} : vector<8x8xbf16>, vector<8x8xbf16>, vector<8x8xf32> -> vector<8x8xf32>
    %88 = vector.extract_strided_slice %5 {offsets = [0, 16], sizes = [8, 8], strides = [1, 1]} : vector<8x32xf32> to vector<8x8xf32>
    %89 = arith.truncf %88 : vector<8x8xf32> to vector<8x8xbf16>
    %c0_58 = arith.constant 0 : index
    %c0_59 = arith.constant 0 : index
    %90 = vector.load %arg7[%c0_58, %c0_59] : memref<8x8xbf16, #tpu.memory_space<vmem>>, vector<8x8xbf16>
    %cst_60 = arith.constant dense<0.000000e+00> : vector<8x8xf32>
    %91 = tpu.matmul %89, %90, %cst_60 {dimension_numbers = #tpu.dot_dimension_numbers<[1], [0], [0], [1], [0, 0, 1, 1], [], []>} : vector<8x8xbf16>, vector<8x8xbf16>, vector<8x8xf32> -> vector<8x8xf32>
    %92 = arith.truncf %83 : vector<8x8xf32> to vector<8x8xbf16>
    %93 = arith.truncf %87 : vector<8x8xf32> to vector<8x8xbf16>
    %cst_61 = arith.constant dense<0.000000e+00> : vector<8x8xf32>
    %94 = tpu.matmul %92, %93, %cst_61 {dimension_numbers = #tpu.dot_dimension_numbers<[1], [1], [0], [0], [0, 0, 1, 0], [], []>} : vector<8x8xbf16>, vector<8x8xbf16>, vector<8x8xf32> -> vector<8x8xf32>
    %cst_62 = arith.constant dense<0xFF800000> : vector<8xf32>
    %95 = vector.multi_reduction <maximumf>, %94, %cst_62 [1] : vector<8x8xf32> to vector<8xf32>
    %96 = vector.shape_cast %95 : vector<8xf32> to vector<8x1xf32>
    %97 = vector.broadcast %96 : vector<8x1xf32> to vector<8x8xf32>
    %98 = arith.subf %94, %97 : vector<8x8xf32>
    %99 = math.exp %98 : vector<8x8xf32>
    %cst_63 = arith.constant dense<0.000000e+00> : vector<8xf32>
    %100 = vector.multi_reduction <add>, %99, %cst_63 [1] : vector<8x8xf32> to vector<8xf32>
    %101 = vector.shape_cast %100 : vector<8xf32> to vector<8x1xf32>
    %102 = arith.truncf %99 : vector<8x8xf32> to vector<8x8xbf16>
    %103 = arith.truncf %91 : vector<8x8xf32> to vector<8x8xbf16>
    %cst_64 = arith.constant dense<0.000000e+00> : vector<8x8xf32>
    %104 = tpu.matmul %102, %103, %cst_64 {dimension_numbers = #tpu.dot_dimension_numbers<[1], [0], [0], [1], [0, 0, 1, 1], [], []>} : vector<8x8xbf16>, vector<8x8xbf16>, vector<8x8xf32> -> vector<8x8xf32>
    %105 = tpu.reciprocal %101 {approx = true} : vector<8x1xf32> -> vector<8x1xf32>
    %106 = vector.broadcast %105 : vector<8x1xf32> to vector<8x8xf32>
    %107 = arith.mulf %104, %106 : vector<8x8xf32>
    %c0_65 = arith.constant 0 : index
    %c0_66 = arith.constant 0 : index
    %108 = vector.load %arg11[%c0_65, %c0_66] : memref<8x32xf32, #tpu.memory_space<vmem>>, vector<8x32xf32>
    %109 = arith.truncf %107 : vector<8x8xf32> to vector<8x8xbf16>
    %c2 = arith.constant 2 : index
    %c0_67 = arith.constant 0 : index
    %c0_68 = arith.constant 0 : index
    %110 = vector.load %arg8[%c2, %c0_67, %c0_68] : memref<4x8x32xbf16, #tpu.memory_space<vmem>>, vector<1x8x32xbf16>
    %111 = vector.shape_cast %110 : vector<1x8x32xbf16> to vector<8x32xbf16>
    %cst_69 = arith.constant dense<0.000000e+00> : vector<8x32xf32>
    %112 = tpu.matmul %109, %111, %cst_69 {dimension_numbers = #tpu.dot_dimension_numbers<[1], [0], [0], [1], [0, 0, 1, 1], [], []>} : vector<8x8xbf16>, vector<8x32xbf16>, vector<8x32xf32> -> vector<8x32xf32>
    %113 = arith.addf %108, %112 : vector<8x32xf32>
    %c0_70 = arith.constant 0 : index
    %c0_71 = arith.constant 0 : index
    %114 = vector.load %arg11[%c0_70, %c0_71] : memref<8x32xf32, #tpu.memory_space<vmem>>, vector<8x32xf32>
    tpu.vector_store %arg11[%c0_70, %c0_71], %113 {strides = array<i32>} : memref<8x32xf32, #tpu.memory_space<vmem>>, vector<8x32xf32>,
    %115 = vector.extract_strided_slice %1 {offsets = [0, 24], sizes = [8, 8], strides = [1, 1]} : vector<8x32xf32> to vector<8x8xf32>
    %116 = arith.truncf %115 : vector<8x8xf32> to vector<8x8xbf16>
    %c0_72 = arith.constant 0 : index
    %c0_73 = arith.constant 0 : index
    %117 = vector.load %arg5[%c0_72, %c0_73] : memref<8x8xbf16, #tpu.memory_space<vmem>>, vector<8x8xbf16>
    %cst_74 = arith.constant dense<0.000000e+00> : vector<8x8xf32>
    %118 = tpu.matmul %116, %117, %cst_74 {dimension_numbers = #tpu.dot_dimension_numbers<[1], [0], [0], [1], [0, 0, 1, 1], [], []>} : vector<8x8xbf16>, vector<8x8xbf16>, vector<8x8xf32> -> vector<8x8xf32>
    %119 = vector.extract_strided_slice %3 {offsets = [0, 24], sizes = [8, 8], strides = [1, 1]} : vector<8x32xf32> to vector<8x8xf32>
    %120 = arith.truncf %119 : vector<8x8xf32> to vector<8x8xbf16>
    %c0_75 = arith.constant 0 : index
    %c0_76 = arith.constant 0 : index
    %121 = vector.load %arg6[%c0_75, %c0_76] : memref<8x8xbf16, #tpu.memory_space<vmem>>, vector<8x8xbf16>
    %cst_77 = arith.constant dense<0.000000e+00> : vector<8x8xf32>
    %122 = tpu.matmul %120, %121, %cst_77 {dimension_numbers = #tpu.dot_dimension_numbers<[1], [0], [0], [1], [0, 0, 1, 1], [], []>} : vector<8x8xbf16>, vector<8x8xbf16>, vector<8x8xf32> -> vector<8x8xf32>
    %123 = vector.extract_strided_slice %5 {offsets = [0, 24], sizes = [8, 8], strides = [1, 1]} : vector<8x32xf32> to vector<8x8xf32>
    %124 = arith.truncf %123 : vector<8x8xf32> to vector<8x8xbf16>
    %c0_78 = arith.constant 0 : index
    %c0_79 = arith.constant 0 : index
    %125 = vector.load %arg7[%c0_78, %c0_79] : memref<8x8xbf16, #tpu.memory_space<vmem>>, vector<8x8xbf16>
    %cst_80 = arith.constant dense<0.000000e+00> : vector<8x8xf32>
    %126 = tpu.matmul %124, %125, %cst_80 {dimension_numbers = #tpu.dot_dimension_numbers<[1], [0], [0], [1], [0, 0, 1, 1], [], []>} : vector<8x8xbf16>, vector<8x8xbf16>, vector<8x8xf32> -> vector<8x8xf32>
    %127 = arith.truncf %118 : vector<8x8xf32> to vector<8x8xbf16>
    %128 = arith.truncf %122 : vector<8x8xf32> to vector<8x8xbf16>
    %cst_81 = arith.constant dense<0.000000e+00> : vector<8x8xf32>
    %129 = tpu.matmul %127, %128, %cst_81 {dimension_numbers = #tpu.dot_dimension_numbers<[1], [1], [0], [0], [0, 0, 1, 0], [], []>} : vector<8x8xbf16>, vector<8x8xbf16>, vector<8x8xf32> -> vector<8x8xf32>
    %cst_82 = arith.constant dense<0xFF800000> : vector<8xf32>
    %130 = vector.multi_reduction <maximumf>, %129, %cst_82 [1] : vector<8x8xf32> to vector<8xf32>
    %131 = vector.shape_cast %130 : vector<8xf32> to vector<8x1xf32>
    %132 = vector.broadcast %131 : vector<8x1xf32> to vector<8x8xf32>
    %133 = arith.subf %129, %132 : vector<8x8xf32>
    %134 = math.exp %133 : vector<8x8xf32>
    %cst_83 = arith.constant dense<0.000000e+00> : vector<8xf32>
    %135 = vector.multi_reduction <add>, %134, %cst_83 [1] : vector<8x8xf32> to vector<8xf32>
    %136 = vector.shape_cast %135 : vector<8xf32> to vector<8x1xf32>
    %137 = arith.truncf %134 : vector<8x8xf32> to vector<8x8xbf16>
    %138 = arith.truncf %126 : vector<8x8xf32> to vector<8x8xbf16>
    %cst_84 = arith.constant dense<0.000000e+00> : vector<8x8xf32>
    %139 = tpu.matmul %137, %138, %cst_84 {dimension_numbers = #tpu.dot_dimension_numbers<[1], [0], [0], [1], [0, 0, 1, 1], [], []>} : vector<8x8xbf16>, vector<8x8xbf16>, vector<8x8xf32> -> vector<8x8xf32>
    %140 = tpu.reciprocal %136 {approx = true} : vector<8x1xf32> -> vector<8x1xf32>
    %141 = vector.broadcast %140 : vector<8x1xf32> to vector<8x8xf32>
    %142 = arith.mulf %139, %141 : vector<8x8xf32>
    %c0_85 = arith.constant 0 : index
    %c0_86 = arith.constant 0 : index
    %143 = vector.load %arg11[%c0_85, %c0_86] : memref<8x32xf32, #tpu.memory_space<vmem>>, vector<8x32xf32>
    %144 = arith.truncf %142 : vector<8x8xf32> to vector<8x8xbf16>
    %c3 = arith.constant 3 : index
    %c0_87 = arith.constant 0 : index
    %c0_88 = arith.constant 0 : index
    %145 = vector.load %arg8[%c3, %c0_87, %c0_88] : memref<4x8x32xbf16, #tpu.memory_space<vmem>>, vector<1x8x32xbf16>
    %146 = vector.shape_cast %145 : vector<1x8x32xbf16> to vector<8x32xbf16>
    %cst_89 = arith.constant dense<0.000000e+00> : vector<8x32xf32>
    %147 = tpu.matmul %144, %146, %cst_89 {dimension_numbers = #tpu.dot_dimension_numbers<[1], [0], [0], [1], [0, 0, 1, 1], [], []>} : vector<8x8xbf16>, vector<8x32xbf16>, vector<8x32xf32> -> vector<8x32xf32>
    %148 = arith.addf %143, %147 : vector<8x32xf32>
    %c0_90 = arith.constant 0 : index
    %c0_91 = arith.constant 0 : index
    %149 = vector.load %arg11[%c0_90, %c0_91] : memref<8x32xf32, #tpu.memory_space<vmem>>, vector<8x32xf32>
    tpu.vector_store %arg11[%c0_90, %c0_91], %148 {strides = array<i32>} : memref<8x32xf32, #tpu.memory_space<vmem>>, vector<8x32xf32>,
    %c0_92 = arith.constant 0 : index
    %c0_93 = arith.constant 0 : index
    %150 = vector.load %arg11[%c0_92, %c0_93] : memref<8x32xf32, #tpu.memory_space<vmem>>, vector<8x32xf32>
    %c0_94 = arith.constant 0 : index
    %c0_95 = arith.constant 0 : index
    %c0_96 = arith.constant 0 : index
    %151 = vector.load %arg10[%c0_94, %c0_95, %c0_96] : memref<1x8x32xf32, #tpu.memory_space<vmem>>, vector<1x8x32xf32>
    %152 = vector.shape_cast %151 : vector<1x8x32xf32> to vector<8x32xf32>
    %153 = vector.shape_cast %150 : vector<8x32xf32> to vector<1x8x32xf32>
    tpu.vector_store %arg10[%c0_94, %c0_95, %c0_96], %153 {strides = array<i32>} : memref<1x8x32xf32, #tpu.memory_space<vmem>>, vector<1x8x32xf32>,
    return
  }
  func.func @transform_0(%arg0: i32, %arg1: i32) -> (i32, i32, i32) {
    %c0_i32 = arith.constant 0 : i32
    %c0_i32_0 = arith.constant 0 : i32
    return %arg0, %arg1, %c0_i32 : i32, i32, i32
  }
  func.func @transform_1(%arg0: i32, %arg1: i32) -> (i32, i32, i32) {
    %c0_i32 = arith.constant 0 : i32
    %c0_i32_0 = arith.constant 0 : i32
    %c0_i32_1 = arith.constant 0 : i32
    return %arg0, %c0_i32, %c0_i32_0 : i32, i32, i32
  }
  func.func @transform_2(%arg0: i32, %arg1: i32) -> (i32, i32, i32) {
    %c0_i32 = arith.constant 0 : i32
    %c0_i32_0 = arith.constant 0 : i32
    %c0_i32_1 = arith.constant 0 : i32
    return %arg0, %c0_i32, %c0_i32_0 : i32, i32, i32
  }
  func.func @transform_3(%arg0: i32, %arg1: i32) -> (i32, i32) {
    %c0_i32 = arith.constant 0 : i32
    %c0_i32_0 = arith.constant 0 : i32
    %c0_i32_1 = arith.constant 0 : i32
    return %c0_i32, %c0_i32_0 : i32, i32
  }
  func.func @transform_4(%arg0: i32, %arg1: i32) -> (i32, i32) {
    %c0_i32 = arith.constant 0 : i32
    %c0_i32_0 = arith.constant 0 : i32
    %c0_i32_1 = arith.constant 0 : i32
    return %c0_i32, %c0_i32_0 : i32, i32
  }
  func.func @transform_5(%arg0: i32, %arg1: i32) -> (i32, i32) {
    %c0_i32 = arith.constant 0 : i32
    %c0_i32_0 = arith.constant 0 : i32
    %c0_i32_1 = arith.constant 0 : i32
    return %c0_i32, %c0_i32_0 : i32, i32
  }
  func.func @transform_6(%arg0: i32, %arg1: i32) -> (i32, i32, i32) {
    %c0_i32 = arith.constant 0 : i32
    %c0_i32_0 = arith.constant 0 : i32
    %c0_i32_1 = arith.constant 0 : i32
    %c0_i32_2 = arith.constant 0 : i32
    return %c0_i32, %c0_i32_0, %c0_i32_1 : i32, i32, i32
  }
  func.func @transform_7(%arg0: i32, %arg1: i32) -> (i32, i32) {
    %c0_i32 = arith.constant 0 : i32
    %c0_i32_0 = arith.constant 0 : i32
    %c0_i32_1 = arith.constant 0 : i32
    return %c0_i32, %c0_i32_0 : i32, i32
  }
  func.func @transform_8(%arg0: i32, %arg1: i32) -> (i32, i32, i32) {
    %c0_i32 = arith.constant 0 : i32
    %c0_i32_0 = arith.constant 0 : i32
    return %arg0, %arg1, %c0_i32 : i32, i32, i32
  }
}

</mosaic_0001>

<bundles_post_ra>
// kernel: _mhsa_pallas.1
= control target key start
LH: loop header
LB: loop body
LE: loop exit
PB: predicated region body
PF: predicated region fallthrough
CT: control target
= control target key end

     0   :  { %s2880_s0 = inlined_call_operand.hbm [shape: f32[2,8,32], index: 0, kind: input, shape index: {}]   ;;  %s2881_s1 = inlined_call_operand.hbm [shape: f32[2,8,32], index: 1, kind: input, shape index: {}]   ;;  %s2882_s2 = inlined_call_operand.hbm [shape: f32[2,8,32], index: 2, kind: input, shape index: {}]   ;;  %s2883_s3 = inlined_call_operand.vmem [shape: bf16[8,8], index: 3, kind: input, shape index: {}]   ;;  %s2884_s4 = inlined_call_operand.hbm [shape: bf16[8,8], index: 4, kind: input, shape index: {}]   ;;  %s2885_s5 = inlined_call_operand.vmem [shape: bf16[8,8], index: 5, kind: input, shape index: {}]   ;;  %s2886_s6 = inlined_call_operand.hbm [shape: bf16[4,8,32], index: 6, kind: input, shape index: {}]   ;;  %s2887_s7 = inlined_call_operand.vmem [shape: f32[1,32], index: 7, kind: input, shape index: {}]   ;;  %s2888_s8 = inlined_call_operand.hbm [shape: f32[2,8,32], index: 8, kind: output, shape index: {}]  }
   0x1   :  { %2905 = sst [smem:[#allocation25_spill]] %s2881_s1 }
   0x2   :  { %2906 = sst [smem:[#allocation26_spill]] %s2884_s4 }
   0x3   :  { %2907 = sst [smem:[#allocation27_spill]] %s2887_s7 }
   0x4   :  { %2908 = sst [smem:[#allocation28_spill]] %s2888_s8 }
   0x5   :  { %13 = vsyncpa [#allocation4], 0 }
   0x6   :  { %15 = vsyncpa [#allocation4 + $0x1], 0 }
   0x7   :  { %16 = vsyncpa [#allocation7], 0 }
   0x8   :  { %18 = vsyncpa [#allocation7 + $0x1], 0 }
   0x9   :  { %19 = vsyncpa [#allocation10], 0 }
   0xa   :  { %20 = vsyncpa [#allocation5], 0 }
   0xb   :  { %22 = vsyncpa [#allocation5 + $0x1], 0  ;;  %s2473_s27 = smov 0   ;;  %s2475_s28 = smov 0  }
   0xc   :  { %s2477_s29 = smov 0   ;;  %s2479_s30 = smov 0  }
   0xd   :  { %s2481_s9 = smov 0   ;;  %s2483_s10 = smov 0  }
   0xe LB: > { %2909 = sst [smem:[#allocation17_spill]] %s2393_s27  ;;  %s2504_s11 = sadd.s32 4294967295, %s2413_s10   ;;  %s2413_s10 = sphi %s2483_s10, %s28_s10   ;;  %s2409_s9 = sphi %s2481_s9, %s2947_s9   ;;  %s2405_s30 = sphi %s2479_s30, %s2946_s30   ;;  %s2401_s29 = sphi %s2477_s29, %s2950_s29   ;;  %s2397_s28 = sphi %s2475_s28, %s2949_s28   ;;  %s2393_s27 = sphi %s2473_s27, %s2948_s27  }
   0xf   : > { %2910 = sst [smem:[#allocation18_spill]] %s2405_s30  ;;  %s1834_s12 = sadd.s32 4294967294, %s2413_s10  }
  0x10   : > { %2911 = sst [smem:[#allocation19_spill]] %s2409_s9  ;;  %p62_p0 = scmp.ne.s32.totalorder %s2397_s28, %s2393_s27 }
  0x11   : > { %2912 = sst [smem:[#allocation20_spill]] %s2413_s10  ;;  %p2896_p1 = scmp.eq.s32.totalorder %s2504_s11, 0 }
  0x12   : > { %p251_p3 = scmp.eq.s32.totalorder %s1834_s12, 1  ;;  %p1835_p5 = scmp.ge.s32.totalorder %s2413_s10, 1 }
  0x13   : > { %p2513_p4 = por %p2896_p1, %p62_p0  ;;  %p258_p7 = scmp.lt.s32.totalorder %s2413_s10, 3 }
  0x14   : > { %p2518_p6 = por %p251_p3, %p62_p0  ;;  %s2415_s16 = smov [#allocation9]  }
  0x15   : > { %s2913_s13 = scalar_select %p2513_p4, 1, 0 }
  0x16   : > { %s2914_s14 = scalar_select %p2518_p6, 1, 0 }
  0x17   : > { %p2523_p8 = pnand %p1835_p5, %p258_p7  ;;  %s274_s17 = sshll.u32 %s2415_s16, 4  ;;  %s275_s17 = int_to_ptr.vmem [resolvable:$true] %s274_s17 }
  0x18   : > { %2915 = sst [smem:[#allocation21_spill]] %s2914_s14  ;;  %s40_s19 = sadd.s32 1, %s2409_s9 }
  0x19   : > { %s2916_s15 = scalar_select %p2523_p8, 1, 0 }
  0x1a   : > { %p2089_p10 = pneg %p2523_p8  ;;  %s49_s20 = sadd.s32 1, %s2401_s29 }
  0x1b   : > { %p42_p12 = scmp.ge.s32.totalorder %s40_s19, 2  ;;  %s2200_s21 = scalar_lea.vmem %s275_s17, 64 }
  0x1c   : > { %p2532_p11 = pnand %p2089_p10, %p2896_p1  ;;  %p2201_p0 = scmp.ne.s32.totalorder %s275_s17, %s2200_s21 }
  0x1d   : > { %p2208_p7 = scmp.lt.s32.totalorder %s275_s17, %s275_s17  ;;  %p2209_p9 = scmp.lt.s32.totalorder %s2200_s21, %s2200_s21 }
  0x1e   : > { %p2897_p13 = pneg %p2532_p11 }
  0x1f   : > { %p2210_p2 = por %p2209_p9, %p2208_p7 }
  0x20   : > { %p2203_p3 = pnand %p2201_p0, %p2897_p13 }
  0x22   : > { %p2204_p5 = pneg %p2203_p3 }
  0x24   : > { %p2211_p10 = pnand %p2210_p2, %p2204_p5 }
  0x26   : > { %2214 = shalt.err (!%p2211_p10)
}
  0x27   : > { %s2918_s4 = sld [smem:[#allocation26_spill]]  ;;  %s2952_s19 = smov (%p42_p12, %s40_s19), 0 }
  0x28   : > { %2919 = sst [smem:[#allocation22_spill]] %s2952_s19  ;;  %p56_p2 = scmp.ne.s32.totalorder %s2401_s29, %s2397_s28 }
  0x29   : > { %p57_p9 = scmp.eq.s32.totalorder %s2413_s10, 0  ;;  %s44_s24 = ssub.s32 %s2409_s9, %s2952_s19 }
  0x2a   : > { %p2112_p0 = scmp.lt.s32.totalorder %s2413_s10, 2  ;;  %p47_p3 = scmp.eq.s32.totalorder %s44_s24, 0 }
  0x2b   : > { %p58_p5 = por %p57_p9, %p56_p2  ;;  %p2920_p7 = scmp.eq.s32.totalorder %s2504_s11, 1 }
  0x2c   : > { %s2890_s26 = sand.u32 1, %s2401_s29   ;;  %s323_s22 = sand.u32 1, %s2413_s10  }
  0x2d   : > { %2092 = dma.hbm_to_vmem [thread:$0]  (!%p2532_p11), %s2918_s4, 64, %s275_s17, [#allocation10]  }
  0x2e   : > { %p2558_p10 = por %p2920_p7, %p56_p2  ;;  %s2568_s16 = sshll.u32 %s2890_s26, 3 }
  0x2f   : > { %s2564_s12 = scalar_select %p47_p3, %s2401_s29, %s49_s20  }
  0x30   : > { %s2921_s25 = scalar_select %p2558_p10, 1, 0 }
  0x31   : > { %2923 = sst [smem:[#allocation24_spill]] %s2564_s12  ;;  %s2571_s17 = sshll.u32 %s2409_s9, 7 }
  0x32   : > { %2922 = sst [smem:[#allocation23_spill]] %s2921_s25  ;;  %p2573_p12 = pnand %p2112_p0, %p58_p5 }
  0x33   : > { %s2925_s1 = sld [smem:[#allocation25_spill]]  ;;  %s327_s20 = scalar_lea.vmem [#allocation6], %s2568_s16 }
  0x34   : > { %s334_s19 = sshll.u32 %s327_s20, 4  ;;  %s2416_s26 = smov [#allocation11]   ;;  %s335_s19 = int_to_ptr.vmem [resolvable:$true] %s334_s19 }
  0x35   : > { %s287_s12 = sshll.u32 %s2416_s26, 4  ;;  %s2583_s14 = scalar_lea.sflag [#allocation7], %s323_s22  ;;  %s288_s12 = int_to_ptr.vmem [resolvable:$true] %s287_s12 }
  0x36   : > { %p2898_p2 = pneg %p2573_p12  ;;  %s2228_s9 = scalar_lea.vmem %s335_s19, 128 }
  0x37   : > { %p2229_p9 = scmp.ne.s32.totalorder %s335_s19, %s2228_s9  ;;  %s2417_s10 = smov [#allocation6]  }
  0x38   : > { %s2233_s27 = sshll.u32 %s2417_s10, 4  ;;  %s2234_s27 = int_to_ptr.vmem [resolvable:$false] %s2233_s27 }
  0x39   : > { %s332_s4 = scalar_lea.hbm %s2925_s1, %s2571_s17  ;;  %p2231_p0 = pnand %p2229_p9, %p2898_p2 }
  0x3a   : > { %s2235_s23 = scalar_lea.vmem %s2234_s27, 256  ;;  %p2236_p5 = scmp.lt.s32.totalorder %s335_s19, %s2234_s27 }
  0x3b   : > { %p2232_p3 = pneg %p2231_p0  ;;  %p2237_p7 = scmp.lt.s32.totalorder %s2235_s23, %s2228_s9 }
  0x3d   : > { %p2238_p1 = por %p2237_p7, %p2236_p5 }
  0x3f   : > { %p2239_p13 = pnand %p2238_p1, %p2232_p3 }
  0x41   : > { %2242 = shalt.err (!%p2239_p13)
}
  0x42   : > { %2102 = dma.hbm_to_vmem [thread:$0]  (!%p2573_p12), %s332_s4, 128, %s335_s19, %s2583_s14  }
  0x43   : > { %s2254_s26 = scalar_lea.vmem %s288_s12, 256  ;;  %p2926_p9 = pneg %p2532_p11 }
  0x44   : > { %p2255_p6 = scmp.ne.s32.totalorder %s288_s12, %s2254_s26  ;;  %p2262_p10 = scmp.lt.s32.totalorder %s288_s12, %s288_s12 }
  0x45   : > { %p2263_p4 = scmp.lt.s32.totalorder %s2254_s26, %s2254_s26 }
  0x46   : > { %p2257_p0 = pnand %p2255_p6, %p2926_p9 }
  0x47   : > { %p2264_p8 = por %p2263_p4, %p2262_p10 }
  0x48   : > { %p2258_p2 = pneg %p2257_p0 }
  0x4a   : > { %p2265_p5 = pnand %p2264_p8, %p2258_p2 }
  0x4c   : > { %2268 = shalt.err (!%p2265_p5)
}
  0x4d   : > { %s2418_s27 = smov 64   ;;  %s2419_s4 = smov 4  }
  0x4e   : > { %2095 = dma.hbm_to_vmem [thread:$0]  (!%p2532_p11), %s2886_s6, 256, %s288_s12, [#allocation10], %s2418_s27, %s2418_s27, %s2419_s4  }
  0x4f   : > { %s314_s24 = scalar_lea.hbm %s2880_s0, %s2571_s17  ;;  %s308_s20 = scalar_lea.vmem [#allocation3], %s2568_s16 }
  0x50   : > { %s316_s23 = sshll.u32 %s308_s20, 4  ;;  %s350_s8 = scalar_lea.hbm %s2882_s2, %s2571_s17  ;;  %s317_s23 = int_to_ptr.vmem [resolvable:$true] %s316_s23 }
  0x51   : > { %s2927_s25 = sand.u32 1, %s2401_s29   ;;  %s2282_s7 = scalar_lea.vmem %s317_s23, 128 }
  0x52   : > { %s305_s30 = scalar_lea.sflag [#allocation4], %s2927_s25  ;;  %p2283_p1 = scmp.ne.s32.totalorder %s317_s23, %s2282_s7 }
  0x53   : > { %p2928_p4 = pneg %p2573_p12  ;;  %s2420_s18 = smov [#allocation3]  }
  0x54   : > { %s2287_s12 = sshll.u32 %s2420_s18, 4  ;;  %s2288_s12 = int_to_ptr.vmem [resolvable:$false] %s2287_s12 }
  0x55   : > { %p2285_p6 = pnand %p2283_p1, %p2928_p4  ;;  %s2289_s27 = scalar_lea.vmem %s2288_s12, 256 }
  0x56   : > { %p2290_p11 = scmp.lt.s32.totalorder %s317_s23, %s2288_s12  ;;  %p2291_p13 = scmp.lt.s32.totalorder %s2289_s27, %s2282_s7 }
  0x57   : > { %p2286_p8 = pneg %p2285_p6 }
  0x58   : > { %p2292_p10 = por %p2291_p13, %p2290_p11 }
  0x5a   : > { %p2293_p2 = pnand %p2292_p10, %p2286_p8 }
  0x5c   : > { %2296 = shalt.err (!%p2293_p2)
}
  0x5d   : > { %2099 = dma.hbm_to_vmem [thread:$0]  (!%p2573_p12), %s314_s24, 128, %s317_s23, %s305_s30  }
  0x5e   : > { %s345_s1 = scalar_lea.vmem [#allocation8], %s2568_s16  ;;  %p2929_p7 = pmov %p2928_p4 }
  0x5f   : > { %s352_s25 = sshll.u32 %s345_s1, 4  ;;  %s2421_s9 = smov [#allocation8]   ;;  %s353_s25 = int_to_ptr.vmem [resolvable:$true] %s352_s25 }
  0x60   : > { %s2310_s4 = scalar_lea.vmem %s353_s25, 128  ;;  %s2315_s10 = sshll.u32 %s2421_s9, 4  ;;  %s2316_s10 = int_to_ptr.vmem [resolvable:$false] %s2315_s10 }
  0x61   : > { %p2311_p3 = scmp.ne.s32.totalorder %s353_s25, %s2310_s4  ;;  %s2317_s7 = scalar_lea.vmem %s2316_s10, 256 }
  0x62   : > { %p2318_p5 = scmp.lt.s32.totalorder %s353_s25, %s2316_s10  ;;  %p2319_p1 = scmp.lt.s32.totalorder %s2317_s7, %s2310_s4 }
  0x63   : > { %p2313_p9 = pnand %p2311_p3, %p2929_p7 }
  0x64   : > { %p2320_p4 = por %p2319_p1, %p2318_p5 }
  0x65   : > { %p2314_p0 = pneg %p2313_p9 }
  0x67   : > { %p2321_p6 = pnand %p2320_p4, %p2314_p0 }
  0x69   : > { %2324 = shalt.err (!%p2321_p6)
}
  0x6a   : > { %2105 = dma.hbm_to_vmem [thread:$0]  (!%p2573_p12), %s350_s8, 128, %s353_s25, %s2583_s14  }
  0x6b   : > { %p2930_p8 = scmp.ne.s32.totalorder %s2916_s15, 0 }
  0x6c   : > { %s2632_s19 = sand.u32 (!%p2930_p8), 1, %s2397_s28   ;;  %p2931_p11 = scmp.ne.s32.totalorder (!%p2930_p8), %s2913_s13, 0 }
  0x6d   : > { %361 = sbr.rel (%p2930_p8) target bundleno = 3375 (0xd2f), region = 52  ;;  %s2635_s22 = sshll.u32 (!%p2930_p8), %s2632_s19, 3 }
  0x6e   : > { %s364_s21 = scalar_lea.sflag (!%p2930_p8), [#allocation4], %s2632_s19  ;;  %s367_s24 = scalar_lea.vmem (!%p2930_p8), [#allocation3], %s2635_s22 }
  0x72   : > { %2376 = dma.done.wait (%p2931_p11), %s364_s21, 128  }
  0x73   : > { %2378 = vsyncadd (%p2931_p11), %s364_s21, 4294967168  ;;  %s372_s8 = sand.u32 1, %s2504_s11   ;;  %s376_s15 = scalar_lea.vmem [#allocation6], %s2635_s22 }
  0x74   : > { %s373_s14 = scalar_lea.sflag [#allocation7], %s372_s8 }
  0x75   : > { %2380 = dma.done.wait (%p2931_p11), %s373_s14, 256  }
  0x76   : > { %2382 = vsyncadd (%p2931_p11), %s373_s14, 4294967040  ;;  %s385_s17 = scalar_lea.vmem [#allocation8], %s2635_s22  ;;  %p2932_p12 = scmp.eq.s32.totalorder %s2504_s11, 0 }
  0x78   : > { %2384 = dma.done.wait (%p2932_p12), [#allocation10], 320   ;;  %p2933_p13 = pmov %p2932_p12 }
  0x79   : > { %v2422_v0 = vmov 0.0   ;;  %vm2423_vm0 = vmmov 0   ;;  %vm455_vm1 = vcmask 1043456   ;;  %v500_v1 = vld [vmem:[#allocation9] sm:$0xf]  ;;  %v437_v7 = vld [vmem:[%s367_s24] sm:$0xff] }
  0x7a   : > { %2386 = vsyncadd (%p2933_p13), [#allocation10], 4294966976  ;;  %1935 = vmatprep.subr.bf16.mxu1 %v2422_v0  ;;  %1929 = vmatprep.subr.bf16.mxu0 %v2422_v0  ;;  %v450_v2 = vld [vmem:[%s2883_s3] sm:$0xf]  ;;  %v505_v4 = vsel %vm455_vm1, %v500_v1, 0  ;;  %vm451_vm2 = vcmask 64512   ;;  %v2667_v8 = vpack.c.bf16 %v437_v7, %v437_v7 }
  0x7b   : > { %1937 = vmatprep.mubr.msk.bf16.mxu1 %vm2423_vm0, %v2422_v0  ;;  %1931 = vmatprep.mubr.msk.bf16.mxu0 %vm2423_vm0, %v2422_v0  ;;  %v438_v3 = vld [vmem:[%s376_s15] sm:$0xff]  ;;  %v457_v5 = vsel %vm455_vm1, %v450_v2, 0  ;;  %v439_v10 = vld [vmem:[%s385_s17] sm:$0xff]  ;;  %s2424_s26 = smov 120   ;;  %s2934_s25 = sld [smem:[#allocation27_spill]]  ;;  %vm447_vm3 = vcmask 261120  }
  0x7c   : > { %v2665_v6 = vpack.c.bf16 %v438_v3, %v438_v3  ;;  %1936 = vmatpush3.bf16.msra.mxu1 %v505_v4  ;;  %1930 = vmatpush3.bf16.msra.mxu0 %v457_v5  ;;  %v548_v9 = vld [vmem:[%s2885_s5] sm:$0xf]  ;;  %v2683_v12 = vpack.c.bf16 %v439_v10, %v439_v10  ;;  %v704_v41 = vld [vmem:[#allocation11] sm:$0xf]  ;;  %v803_v51 = vld [vmem:[#allocation9] sm:$0xf] }
  0x7d   : > { %1947 = vmatprep.subr.bf16.mxu1 %v2422_v0  ;;  %1941 = vmatprep.subr.bf16.mxu0 %v2422_v0  ;;  %v553_v11 = vsel %vm455_vm1, %v548_v9, 0  ;;  %v709_v42 = vsel %vm455_vm1, %v704_v41, 0  ;;  %v753_v43 = vld [vmem:[%s2883_s3] sm:$0xf]  ;;  %v811_v55 = vsel %vm455_vm1, %v803_v51, 0  ;;  %s2425_s10 = smov 112  }
  0x7e   : > { %805 = vrot.lane.b32.xlu1 %v2665_v6, %s2424_s26  ;;  %v761_v45 = vsel %vm455_vm1, %v753_v43, 0  ;;  %v853_v62 = vld [vmem:[%s2885_s5] sm:$0xf]  ;;  %v1111_v43 = vld [vmem:[#allocation9] sm:$0xf]  ;;  %s2426_s24 = smov 104  }
  0x7f   : > { %1938 = vmatmul.mubr.msk.bf16.vlgmr.msra.gmra.mxu1 %vm451_vm2, %v2665_v6  ;;  %1932 = vmatmul.mubr.msk.bf16.vlgmr.msra.gmra.mxu0 %vm451_vm2, %v2667_v8  ;;  %v861_v63 = vsel %vm455_vm1, %v853_v62, 0  ;;  %v1160_v51 = vld [vmem:[%s2885_s5] sm:$0xf]  ;;  %s2935_s13 = sld [smem:[#allocation18_spill]]  ;;  %s435_s23 = scalar_lea.vmem [#allocation12], %s2635_s22 }
  0x80   : > { %1949 = vmatprep.mubr.msk.bf16.mxu1 %vm2423_vm0, %v2422_v0  ;;  %1943 = vmatprep.mubr.msk.bf16.mxu0 %vm2423_vm0, %v2422_v0  ;;  %s2936_s20 = sld [smem:[#allocation23_spill]]  ;;  %s1677_s4 = scalar_lea.sflag [#allocation5], %s2632_s19 }
  0x81   : > { %1942 = vmatpush3.bf16.msra.mxu0 %v553_v11  ;;  %v1852_v47 = vld [vmem:[%s2934_s25] ss:$0 sm:$0xff]  ;;  %s2937_s27 = sld [smem:[#allocation28_spill]] }
  0x82   : > { %1953 = vmatprep.subr.bf16.mxu0 %v2422_v0  ;;  %755 = vrot.lane.b32.xlu1 %v2667_v8, %s2424_s26  ;;  %448 = vst.msk [vmem:[#allocation2] sm:$0xff] %vm447_vm3, %v1852_v47  ;;  %v1118_v47 = vsel %vm455_vm1, %v1111_v43, 0 }
  0x85   : > { %s1878_s11 = sshll.u32 %s2935_s13, 7 }
  0x86   : > { %p2939_p2 = scmp.ne.s32.totalorder %s2936_s20, 0 }
  0x87   : > { %1944 = vmatmul.mubr.msk.bf16.vlgmr.msra.gmra.mxu0 %vm451_vm2, %v2683_v12  ;;  %s2938_s1 = smov %s2937_s27  ;;  %s2837_s25 = scalar_lea.hbm %s2937_s27, %s1878_s11 }
  0x88   : > { %1955 = vmatprep.mubr.msk.bf16.mxu0 %vm2423_vm0, %v2422_v0 }
  0x89   : > { %v702_v2 = vld [vmem:[#allocation2] sm:$0xff] }
  0xf0   : > { %v806_v44 = vpop.permute.xlu1 %805 }
  0xf4   : > { %v756_v46 = vpop.permute.xlu1 %755 }
 0x13f   : > { %v541_v13 = vpop.f32.mrf.mxu1  ;;  %v493_v14 = vpop.f32.mrf.mxu0 }
 0x140   : > { %v596_v15 = vpack.c.bf16 %v541_v13, %v541_v13  ;;  %v595_v23 = vpack.c.bf16 %v493_v14, %v493_v14 }
 0x141   : > { %v1939_v16 = vpop.f32.mrf.mxu1  ;;  %v1933_v17 = vpop.f32.mrf.mxu0 }
 0x142   : > { %v601_v18 = vsel %vm451_vm2, %v596_v15, 0 }
 0x143   : > { %v544_v19 = vpop.f32.mrf.mxu1  ;;  %1948 = vmatpush3.bf16.xpose.msra.mxu1 %v601_v18  ;;  %v496_v20 = vpop.f32.mrf.mxu0 }
 0x144   : > { %1959 = vmatprep.subr.bf16.mxu1 %v2422_v0 }
 0x145   : > { %v1940_v21 = vpop.f32.mrf.mxu1  ;;  %v1934_v22 = vpop.f32.mrf.mxu0 }
 0x147   : > { %v589_v29 = vpop.f32.mrf.mxu0 }
 0x148   : > { %v653_v30 = vpack.c.bf16 %v589_v29, %v589_v29 }
 0x149   : > { %v1945_v31 = vpop.f32.mrf.mxu0 }
 0x14a   : > { %1950 = vmatmul.mubr.msk.bf16.vlgmr.msra.gmra.mxu1 %vm451_vm2, %v595_v23  ;;  %v658_v32 = vsel %vm455_vm1, %v653_v30, 0 }
 0x14b   : > { %1961 = vmatprep.mubr.msk.bf16.mxu1 %vm2423_vm0, %v2422_v0  ;;  %v592_v33 = vpop.f32.mrf.mxu0  ;;  %1954 = vmatpush3.bf16.msra.mxu0 %v658_v32 }
 0x14c   : > { %1965 = vmatprep.subr.bf16.mxu0 %v2422_v0  ;;  %1960 = vmatpush3.bf16.msra.mxu1 %v709_v42 }
 0x14d   : > { %v1946_v34 = vpop.f32.mrf.mxu0  ;;  %1971 = vmatprep.subr.bf16.mxu1 %v2422_v0 }
 0x20a   : > { %v637_v24 = vpop.f32.mrf.mxu1 }
 0x20b   : > { %v643_v25 = vsel %vm451_vm2, %v637_v24, -inf }
 0x20c   : > { %644 = vmax.xlane.f32.xlu0 %v643_v25  ;;  %v1951_v26 = vpop.f32.mrf.mxu1 }
 0x20e   : > { %v640_v27 = vpop.f32.mrf.mxu1 }
 0x210   : > { %v1952_v28 = vpop.f32.mrf.mxu1 }
 0x295   : > { %v645_v35 = vpop.xlane.xlu0 %644 }
 0x296   : > { %v646_v36 = vsub.f32 %v637_v24, %v645_v35  ;;  %v1013_v35 = vld [vmem:[#allocation11 + $0x4] sm:$0xf] }
 0x298   : > { %v647_v37 = vmul.f32 1.442695, %v646_v36  ;;  %v1018_v36 = vsel %vm455_vm1, %v1013_v35, 0 }
 0x29a   : > { %2173 = vpow2.f32 %v647_v37  ;;  %v1062_v37 = vld [vmem:[%s2883_s3] sm:$0xf] }
 0x2a7   : > { %v2174_v38 = vpop.eup %2173 }
 0x2a8   : > { %v649_v39 = vsel %vm451_vm2, %v2174_v38, 0.0  ;;  %v652_v40 = vpack.c.bf16 %v2174_v38, %v2174_v38  ;;  %v1069_v38 = vsel %vm455_vm1, %v1062_v37, 0 }
 0x2a9   : > { %650 = vadd.xlane.f32.xlu0 %v649_v39 }
 0x2aa   : > { %1956 = vmatmul.mubr.msk.bf16.vlgmr.msra.gmra.mxu0 %vm451_vm2, %v652_v40 }
 0x2ab   : > { %1967 = vmatprep.mubr.msk.bf16.mxu0 %vm2423_vm0, %v2422_v0  ;;  %1966 = vmatpush3.bf16.msra.mxu0 %v761_v45 }
 0x2ac   : > { %1977 = vmatprep.subr.bf16.mxu0 %v2422_v0 }
 0x2b2   : > { %1968 = vmatmul.mubr.msk.bf16.vlgmr.msra.gmra.mxu0 %vm451_vm2, %v756_v46 }
 0x2b3   : > { %1979 = vmatprep.mubr.msk.bf16.mxu0 %vm2423_vm0, %v2422_v0  ;;  %1978 = vmatpush3.bf16.msra.mxu0 %v861_v63 }
 0x2b4   : > { %1989 = vmatprep.subr.bf16.mxu0 %v2422_v0 }
 0x2bf   : > { %855 = vrot.lane.b32.xlu0 %v2683_v12, %s2424_s26  ;;  %s1691_s26 = sshll.u32 %s435_s23, 4  ;;  %s1692_s26 = int_to_ptr.vmem [resolvable:$true] %s1691_s26 }
 0x2c0   : > { %s2325_s9 = scalar_lea.vmem %s1692_s26, 128 }
 0x2c1   : > { %p2326_p10 = scmp.ne.s32.totalorder %s1692_s26, %s2325_s9 }
 0x2c3   : > { %p2327_p3 = pnand %p2326_p10, %p2939_p2 }
 0x2c5   : > { %p2328_p7 = pneg %p2327_p3 }
 0x332   : > { %v651_v48 = vpop.xlane.xlu0 %650 }
 0x333   : > { %2175 = vrcp.f32 %v651_v48 }
 0x336   : > { %v856_v1 = vpop.permute.xlu0 %855 }
 0x337   : > { %1980 = vmatmul.mubr.msk.bf16.vlgmr.msra.gmra.mxu0 %vm451_vm2, %v856_v1 }
 0x338   : > { %1991 = vmatprep.mubr.msk.bf16.mxu0 %vm2423_vm0, %v2422_v0 }
 0x340   : > { %v2176_v49 = vpop.eup %2175 }
 0x36a   : > { %v694_v50 = vpop.f32.mrf.mxu0 }
 0x36b   : > { %v701_v52 = vmul.f32 %v2176_v49, %v694_v50 }
 0x36c   : > { %v1957_v53 = vpop.f32.mrf.mxu0 }
 0x36d   : > { %v703_v54 = vpack.c.bf16 %v701_v52, %v701_v52  ;;  %v1167_v52 = vsel %vm455_vm1, %v1160_v51, 0 }
 0x36e   : > { %v697_v56 = vpop.f32.mrf.mxu0 }
 0x36f   : > { %1962 = vmatmul.mubr.msk.bf16.vlgmr.msra.gmra.mxu1 %vm451_vm2, %v703_v54 }
 0x370   : > { %v1958_v57 = vpop.f32.mrf.mxu0  ;;  %1972 = vmatpush3.bf16.msra.mxu1 %v811_v55  ;;  %1973 = vmatprep.mubr.msk.bf16.mxu1 %vm2423_vm0, %v2422_v0 }
 0x371   : > { %1983 = vmatprep.subr.bf16.mxu1 %v2422_v0 }
 0x372   : > { %v797_v58 = vpop.f32.mrf.mxu0 }
 0x373   : > { %v903_v17 = vpack.c.bf16 %v797_v58, %v797_v58 }
 0x374   : > { %v1969_v59 = vpop.f32.mrf.mxu0 }
 0x376   : > { %v800_v60 = vpop.f32.mrf.mxu0 }
 0x377   : > { %1974 = vmatmul.mubr.msk.bf16.vlgmr.msra.gmra.mxu1 %vm451_vm2, %v806_v44 }
 0x378   : > { %1985 = vmatprep.mubr.msk.bf16.mxu1 %vm2423_vm0, %v2422_v0  ;;  %v1970_v61 = vpop.f32.mrf.mxu0 }
 0x3f7   : > { %v897_v23 = vpop.f32.mrf.mxu0 }
 0x3f8   : > { %v961_v24 = vpack.c.bf16 %v897_v23, %v897_v23 }
 0x3f9   : > { %v1981_v25 = vpop.f32.mrf.mxu0 }
 0x3fa   : > { %v966_v26 = vsel %vm455_vm1, %v961_v24, 0 }
 0x3fb   : > { %v900_v27 = vpop.f32.mrf.mxu0  ;;  %1990 = vmatpush3.bf16.msra.mxu0 %v966_v26 }
 0x3fc   : > { %2001 = vmatprep.subr.bf16.mxu0 %v2422_v0 }
 0x3fd   : > { %v1982_v28 = vpop.f32.mrf.mxu0 }
 0x3fe   : > { %v1319_v28 = vld [vmem:[#allocation11 + $0x8] sm:$0xf] }
 0x42f   : > { %v745_v3 = vpop.f32.mrf.mxu1 }
 0x430   : > { %v751_v4 = vadd.f32 %v745_v3, %v702_v2 }
 0x431   : > { %v1963_v5 = vpop.f32.mrf.mxu1 }
 0x432   : > { %752 = vst.msk [vmem:[#allocation2] sm:$0xff] %vm447_vm3, %v751_v4 }
 0x433   : > { %v748_v7 = vpop.f32.mrf.mxu1 }
 0x435   : > { %v1964_v9 = vpop.f32.mrf.mxu1 }
 0x437   : > { %v847_v10 = vpop.f32.mrf.mxu1 }
 0x438   : > { %v904_v11 = vpack.c.bf16 %v847_v10, %v847_v10 }
 0x439   : > { %v1975_v13 = vpop.f32.mrf.mxu1  ;;  %v1010_v58 = vld [vmem:[#allocation2] sm:$0xff] }
 0x43a   : > { %v909_v14 = vsel %vm451_vm2, %v904_v11, 0 }
 0x43b   : > { %v850_v15 = vpop.f32.mrf.mxu1  ;;  %1984 = vmatpush3.bf16.xpose.msra.mxu1 %v909_v14 }
 0x43c   : > { %1995 = vmatprep.subr.bf16.mxu1 %v2422_v0 }
 0x43d   : > { %v1976_v16 = vpop.f32.mrf.mxu1 }
 0x442   : > { %1986 = vmatmul.mubr.msk.bf16.vlgmr.msra.gmra.mxu1 %vm451_vm2, %v903_v17 }
 0x443   : > { %1997 = vmatprep.mubr.msk.bf16.mxu1 %vm2423_vm0, %v2422_v0  ;;  %1996 = vmatpush3.bf16.msra.mxu1 %v1018_v36 }
 0x444   : > { %2007 = vmatprep.subr.bf16.mxu1 %v2422_v0 }
 0x502   : > { %v945_v18 = vpop.f32.mrf.mxu1 }
 0x503   : > { %v951_v19 = vsel %vm451_vm2, %v945_v18, -inf }
 0x504   : > { %952 = vmax.xlane.f32.xlu1 %v951_v19  ;;  %v1987_v20 = vpop.f32.mrf.mxu1 }
 0x506   : > { %v948_v21 = vpop.f32.mrf.mxu1 }
 0x508   : > { %v1988_v22 = vpop.f32.mrf.mxu1 }
 0x515   : > { %1112 = vrot.lane.b32.xlu1 %v2665_v6, %s2425_s10 }
 0x519   : > { %1161 = vrot.lane.b32.xlu1 %v2683_v12, %s2425_s10 }
 0x58d   : > { %v953_v29 = vpop.xlane.xlu1 %952 }
 0x58e   : > { %v954_v30 = vsub.f32 %v945_v18, %v953_v29  ;;  %v1324_v29 = vsel %vm455_vm1, %v1319_v28, 0 }
 0x590   : > { %v955_v31 = vmul.f32 1.442695, %v954_v30 }
 0x591   : > { %v1113_v50 = vpop.permute.xlu1 %1112 }
 0x592   : > { %2177 = vpow2.f32 %v955_v31 }
 0x595   : > { %v1162_v53 = vpop.permute.xlu1 %1161 }
 0x59f   : > { %v2178_v32 = vpop.eup %2177 }
 0x5a0   : > { %v957_v33 = vsel %vm451_vm2, %v2178_v32, 0.0  ;;  %v960_v34 = vpack.c.bf16 %v2178_v32, %v2178_v32 }
 0x5a1   : > { %958 = vadd.xlane.f32.xlu0 %v957_v33 }
 0x5a2   : > { %1992 = vmatmul.mubr.msk.bf16.vlgmr.msra.gmra.mxu0 %vm451_vm2, %v960_v34 }
 0x5a3   : > { %2003 = vmatprep.mubr.msk.bf16.mxu0 %vm2423_vm0, %v2422_v0  ;;  %2002 = vmatpush3.bf16.msra.mxu0 %v1069_v38 }
 0x5a4   : > { %2013 = vmatprep.subr.bf16.mxu0 %v2422_v0 }
 0x5b7   : > { %1063 = vrot.lane.b32.xlu0 %v2667_v8, %s2425_s10  ;;  %s2427_s10 = smov [#allocation12]  }
 0x5b8   : > { %s2329_s7 = sshll.u32 %s2427_s10, 4  ;;  %s2330_s7 = int_to_ptr.vmem [resolvable:$false] %s2329_s7 }
 0x5b9   : > { %s2331_s22 = scalar_lea.vmem %s2330_s7, 256  ;;  %p2332_p9 = scmp.lt.s32.totalorder %s1692_s26, %s2330_s7 }
 0x5ba   : > { %p2333_p0 = scmp.lt.s32.totalorder %s2331_s22, %s2325_s9 }
 0x5bc   : > { %p2334_p5 = por %p2333_p0, %p2332_p9 }
 0x5be   : > { %p2335_p1 = pnand %p2334_p5, %p2328_p7 }
 0x62a   : > { %v959_v39 = vpop.xlane.xlu0 %958 }
 0x62b   : > { %2179 = vrcp.f32 %v959_v39 }
 0x62e   : > { %v1064_v40 = vpop.permute.xlu0 %1063 }
 0x62f   : > { %2004 = vmatmul.mubr.msk.bf16.vlgmr.msra.gmra.mxu0 %vm451_vm2, %v1064_v40 }
 0x630   : > { %2015 = vmatprep.mubr.msk.bf16.mxu0 %vm2423_vm0, %v2422_v0  ;;  %2014 = vmatpush3.bf16.msra.mxu0 %v1167_v52 }
 0x631   : > { %2025 = vmatprep.subr.bf16.mxu0 %v2422_v0 }
 0x637   : > { %2016 = vmatmul.mubr.msk.bf16.vlgmr.msra.gmra.mxu0 %vm451_vm2, %v1162_v53 }
 0x638   : > { %v2180_v41 = vpop.eup %2179  ;;  %2027 = vmatprep.mubr.msk.bf16.mxu0 %vm2423_vm0, %v2422_v0 }
 0x662   : > { %v1002_v42 = vpop.f32.mrf.mxu0 }
 0x663   : > { %v1009_v44 = vmul.f32 %v2180_v41, %v1002_v42  ;;  %v1466_v41 = vld [vmem:[%s2885_s5] sm:$0xf] }
 0x664   : > { %v1993_v45 = vpop.f32.mrf.mxu0  ;;  %v1473_v42 = vsel %vm455_vm1, %v1466_v41, 0 }
 0x665   : > { %v1011_v46 = vpack.c.bf16 %v1009_v44, %v1009_v44 }
 0x666   : > { %v1005_v48 = vpop.f32.mrf.mxu0 }
 0x667   : > { %1998 = vmatmul.mubr.msk.bf16.vlgmr.msra.gmra.mxu1 %vm451_vm2, %v1011_v46 }
 0x668   : > { %v1994_v49 = vpop.f32.mrf.mxu0  ;;  %2008 = vmatpush3.bf16.msra.mxu1 %v1118_v47  ;;  %2009 = vmatprep.mubr.msk.bf16.mxu1 %vm2423_vm0, %v2422_v0 }
 0x669   : > { %2019 = vmatprep.subr.bf16.mxu1 %v2422_v0 }
 0x66f   : > { %2010 = vmatmul.mubr.msk.bf16.vlgmr.msra.gmra.mxu1 %vm451_vm2, %v1113_v50 }
 0x670   : > { %2021 = vmatprep.mubr.msk.bf16.mxu1 %vm2423_vm0, %v2422_v0 }
 0x6ef   : > { %v1105_v54 = vpop.f32.mrf.mxu0 }
 0x6f0   : > { %v1209_v9 = vpack.c.bf16 %v1105_v54, %v1105_v54 }
 0x6f1   : > { %v2005_v55 = vpop.f32.mrf.mxu0 }
 0x6f3   : > { %v1108_v56 = vpop.f32.mrf.mxu0 }
 0x6f5   : > { %v2006_v57 = vpop.f32.mrf.mxu0 }
 0x6f7   : > { %v1203_v16 = vpop.f32.mrf.mxu0 }
 0x6f8   : > { %v1267_v17 = vpack.c.bf16 %v1203_v16, %v1203_v16 }
 0x6f9   : > { %v2017_v18 = vpop.f32.mrf.mxu0 }
 0x6fa   : > { %v1272_v19 = vsel %vm455_vm1, %v1267_v17, 0  ;;  %v1625_v17 = vld [vmem:[#allocation11 + $0xc] sm:$0xf] }
 0x6fb   : > { %v1206_v20 = vpop.f32.mrf.mxu0  ;;  %2026 = vmatpush3.bf16.msra.mxu0 %v1272_v19  ;;  %v1630_v18 = vsel %vm455_vm1, %v1625_v17, 0 }
 0x6fc   : > { %2037 = vmatprep.subr.bf16.mxu0 %v2422_v0 }
 0x6fd   : > { %v2018_v21 = vpop.f32.mrf.mxu0 }
 0x727   : > { %v1054_v59 = vpop.f32.mrf.mxu1 }
 0x728   : > { %v1060_v60 = vadd.f32 %v1054_v59, %v1010_v58 }
 0x729   : > { %v1999_v61 = vpop.f32.mrf.mxu1 }
 0x72a   : > { %1061 = vst.msk [vmem:[#allocation2] sm:$0xff] %vm447_vm3, %v1060_v60 }
 0x72b   : > { %v1057_v62 = vpop.f32.mrf.mxu1 }
 0x72d   : > { %v2000_v63 = vpop.f32.mrf.mxu1 }
 0x72f   : > { %v1154_v1 = vpop.f32.mrf.mxu1 }
 0x730   : > { %v1210_v2 = vpack.c.bf16 %v1154_v1, %v1154_v1 }
 0x731   : > { %v2011_v3 = vpop.f32.mrf.mxu1  ;;  %v1316_v48 = vld [vmem:[#allocation2] sm:$0xff] }
 0x732   : > { %v1215_v4 = vsel %vm451_vm2, %v1210_v2, 0 }
 0x733   : > { %v1157_v5 = vpop.f32.mrf.mxu1  ;;  %2020 = vmatpush3.bf16.xpose.msra.mxu1 %v1215_v4 }
 0x734   : > { %2031 = vmatprep.subr.bf16.mxu1 %v2422_v0 }
 0x735   : > { %v2012_v7 = vpop.f32.mrf.mxu1 }
 0x73a   : > { %2022 = vmatmul.mubr.msk.bf16.vlgmr.msra.gmra.mxu1 %vm451_vm2, %v1209_v9 }
 0x73b   : > { %2033 = vmatprep.mubr.msk.bf16.mxu1 %vm2423_vm0, %v2422_v0  ;;  %2032 = vmatpush3.bf16.msra.mxu1 %v1324_v29 }
 0x73c   : > { %2043 = vmatprep.subr.bf16.mxu1 %v2422_v0 }
 0x7fa   : > { %v1251_v10 = vpop.f32.mrf.mxu1 }
 0x7fb   : > { %v1257_v11 = vsel %vm451_vm2, %v1251_v10, -inf }
 0x7fc   : > { %1258 = vmax.xlane.f32.xlu1 %v1257_v11  ;;  %v2023_v13 = vpop.f32.mrf.mxu1 }
 0x7fe   : > { %v1254_v14 = vpop.f32.mrf.mxu1 }
 0x800   : > { %v2024_v15 = vpop.f32.mrf.mxu1 }
 0x80d   : > { %1418 = vrot.lane.b32.xlu1 %v2665_v6, %s2426_s24  ;;  %v1368_v6 = vld [vmem:[%s2883_s3] sm:$0xf] }
 0x811   : > { %1467 = vrot.lane.b32.xlu1 %v2683_v12, %s2426_s24  ;;  %v1375_v12 = vsel %vm455_vm1, %v1368_v6, 0 }
 0x885   : > { %v1259_v22 = vpop.xlane.xlu1 %1258 }
 0x886   : > { %v1260_v23 = vsub.f32 %v1251_v10, %v1259_v22 }
 0x888   : > { %v1261_v24 = vmul.f32 1.442695, %v1260_v23 }
 0x889   : > { %v1419_v40 = vpop.permute.xlu1 %1418 }
 0x88a   : > { %2181 = vpow2.f32 %v1261_v24 }
 0x88d   : > { %v1468_v43 = vpop.permute.xlu1 %1467 }
 0x897   : > { %v2182_v25 = vpop.eup %2181 }
 0x898   : > { %v1263_v26 = vsel %vm451_vm2, %v2182_v25, 0.0  ;;  %v1266_v27 = vpack.c.bf16 %v2182_v25, %v2182_v25 }
 0x899   : > { %1264 = vadd.xlane.f32.xlu0 %v1263_v26 }
 0x89a   : > { %2028 = vmatmul.mubr.msk.bf16.vlgmr.msra.gmra.mxu0 %vm451_vm2, %v1266_v27 }
 0x89b   : > { %2039 = vmatprep.mubr.msk.bf16.mxu0 %vm2423_vm0, %v2422_v0  ;;  %2038 = vmatpush3.bf16.msra.mxu0 %v1375_v12 }
 0x89c   : > { %2049 = vmatprep.subr.bf16.mxu0 %v2422_v0 }
 0x8af   : > { %1369 = vrot.lane.b32.xlu0 %v2667_v8, %s2426_s24  ;;  %v1417_v8 = vld [vmem:[#allocation9] sm:$0xf] }
 0x8b0   : > { %v1424_v37 = vsel %vm455_vm1, %v1417_v8, 0 }
 0x922   : > { %v1265_v30 = vpop.xlane.xlu0 %1264 }
 0x923   : > { %2183 = vrcp.f32 %v1265_v30 }
 0x926   : > { %v1370_v31 = vpop.permute.xlu0 %1369 }
 0x927   : > { %2040 = vmatmul.mubr.msk.bf16.vlgmr.msra.gmra.mxu0 %vm451_vm2, %v1370_v31 }
 0x928   : > { %2051 = vmatprep.mubr.msk.bf16.mxu0 %vm2423_vm0, %v2422_v0  ;;  %2050 = vmatpush3.bf16.msra.mxu0 %v1473_v42 }
 0x929   : > { %2061 = vmatprep.subr.bf16.mxu0 %v2422_v0 }
 0x92f   : > { %2052 = vmatmul.mubr.msk.bf16.vlgmr.msra.gmra.mxu0 %vm451_vm2, %v1468_v43 }
 0x930   : > { %v2184_v32 = vpop.eup %2183  ;;  %2063 = vmatprep.mubr.msk.bf16.mxu0 %vm2423_vm0, %v2422_v0 }
 0x95a   : > { %v1308_v33 = vpop.f32.mrf.mxu0 }
 0x95b   : > { %v1315_v34 = vmul.f32 %v2184_v32, %v1308_v33 }
 0x95c   : > { %v2029_v35 = vpop.f32.mrf.mxu0 }
 0x95d   : > { %v1317_v36 = vpack.c.bf16 %v1315_v34, %v1315_v34 }
 0x95e   : > { %v1311_v38 = vpop.f32.mrf.mxu0 }
 0x95f   : > { %2034 = vmatmul.mubr.msk.bf16.vlgmr.msra.gmra.mxu1 %vm451_vm2, %v1317_v36 }
 0x960   : > { %v2030_v39 = vpop.f32.mrf.mxu0  ;;  %2044 = vmatpush3.bf16.msra.mxu1 %v1424_v37  ;;  %2045 = vmatprep.mubr.msk.bf16.mxu1 %vm2423_vm0, %v2422_v0 }
 0x961   : > { %2055 = vmatprep.subr.bf16.mxu1 %v2422_v0 }
 0x967   : > { %2046 = vmatmul.mubr.msk.bf16.vlgmr.msra.gmra.mxu1 %vm451_vm2, %v1419_v40 }
 0x968   : > { %2057 = vmatprep.mubr.msk.bf16.mxu1 %vm2423_vm0, %v2422_v0 }
 0x9e7   : > { %v1411_v44 = vpop.f32.mrf.mxu0 }
 0x9e8   : > { %v1515_v60 = vpack.c.bf16 %v1411_v44, %v1411_v44 }
 0x9e9   : > { %v2041_v45 = vpop.f32.mrf.mxu0 }
 0x9eb   : > { %v1414_v46 = vpop.f32.mrf.mxu0 }
 0x9ed   : > { %v2042_v47 = vpop.f32.mrf.mxu0 }
 0x9ef   : > { %v1509_v3 = vpop.f32.mrf.mxu0 }
 0x9f0   : > { %v1573_v4 = vpack.c.bf16 %v1509_v3, %v1509_v3 }
 0x9f1   : > { %v2053_v5 = vpop.f32.mrf.mxu0 }
 0x9f2   : > { %v1578_v7 = vsel %vm455_vm1, %v1573_v4, 0 }
 0x9f3   : > { %v1512_v9 = vpop.f32.mrf.mxu0  ;;  %2062 = vmatpush3.bf16.msra.mxu0 %v1578_v7 }
 0x9f5   : > { %v2054_v10 = vpop.f32.mrf.mxu0 }
 0xa1f   : > { %v1360_v49 = vpop.f32.mrf.mxu1 }
 0xa20   : > { %v1366_v50 = vadd.f32 %v1360_v49, %v1316_v48 }
 0xa21   : > { %v2035_v51 = vpop.f32.mrf.mxu1 }
 0xa22   : > { %1367 = vst.msk [vmem:[#allocation2] sm:$0xff] %vm447_vm3, %v1366_v50 }
 0xa23   : > { %v1363_v52 = vpop.f32.mrf.mxu1 }
 0xa25   : > { %v2036_v53 = vpop.f32.mrf.mxu1 }
 0xa27   : > { %v1460_v54 = vpop.f32.mrf.mxu1 }
 0xa28   : > { %v1516_v55 = vpack.c.bf16 %v1460_v54, %v1460_v54 }
 0xa29   : > { %v2047_v56 = vpop.f32.mrf.mxu1  ;;  %v1622_v27 = vld [vmem:[#allocation2] sm:$0xff] }
 0xa2a   : > { %v1521_v57 = vsel %vm451_vm2, %v1516_v55, 0 }
 0xa2b   : > { %v1463_v58 = vpop.f32.mrf.mxu1  ;;  %2056 = vmatpush3.bf16.xpose.msra.mxu1 %v1521_v57 }
 0xa2c   : > { %2067 = vmatprep.subr.bf16.mxu1 %v2422_v0 }
 0xa2d   : > { %v2048_v59 = vpop.f32.mrf.mxu1 }
 0xa32   : > { %2058 = vmatmul.mubr.msk.bf16.vlgmr.msra.gmra.mxu1 %vm451_vm2, %v1515_v60 }
 0xa33   : > { %2069 = vmatprep.mubr.msk.bf16.mxu1 %vm2423_vm0, %v2422_v0  ;;  %2068 = vmatpush3.bf16.msra.mxu1 %v1630_v18 }
 0xaf2   : > { %v1557_v61 = vpop.f32.mrf.mxu1 }
 0xaf3   : > { %v1563_v62 = vsel %vm451_vm2, %v1557_v61, -inf }
 0xaf4   : > { %1564 = vmax.xlane.f32.xlu1 %v1563_v62  ;;  %v2059_v63 = vpop.f32.mrf.mxu1 }
 0xaf6   : > { %v1560_v1 = vpop.f32.mrf.mxu1 }
 0xaf8   : > { %v2060_v2 = vpop.f32.mrf.mxu1 }
 0xb7d   : > { %v1565_v11 = vpop.xlane.xlu1 %1564 }
 0xb7e   : > { %v1566_v13 = vsub.f32 %v1557_v61, %v1565_v11 }
 0xb80   : > { %v1567_v14 = vmul.f32 1.442695, %v1566_v13 }
 0xb82   : > { %2185 = vpow2.f32 %v1567_v14 }
 0xb8f   : > { %v2186_v0 = vpop.eup %2185 }
 0xb90   : > { %v1569_v15 = vsel %vm451_vm2, %v2186_v0, 0.0  ;;  %v1572_v16 = vpack.c.bf16 %v2186_v0, %v2186_v0 }
 0xb91   : > { %1570 = vadd.xlane.f32.xlu0 %v1569_v15 }
 0xb92   : > { %2064 = vmatmul.mubr.msk.bf16.vlgmr.msra.gmra.mxu0 %vm451_vm2, %v1572_v16 }
 0xc1a   : > { %v1571_v19 = vpop.xlane.xlu0 %1570 }
 0xc1b   : > { %2187 = vrcp.f32 %v1571_v19 }
 0xc28   : > { %v2188_v20 = vpop.eup %2187 }
 0xc52   : > { %v1614_v21 = vpop.f32.mrf.mxu0 }
 0xc53   : > { %v1621_v22 = vmul.f32 %v2188_v20, %v1614_v21 }
 0xc54   : > { %v2065_v23 = vpop.f32.mrf.mxu0 }
 0xc55   : > { %v1623_v24 = vpack.c.bf16 %v1621_v22, %v1621_v22 }
 0xc56   : > { %v1617_v25 = vpop.f32.mrf.mxu0 }
 0xc57   : > { %2070 = vmatmul.mubr.msk.bf16.vlgmr.msra.gmra.mxu1 %vm451_vm2, %v1623_v24 }
 0xc58   : > { %v2066_v26 = vpop.f32.mrf.mxu0 }
 0xd17   : > { %v1666_v28 = vpop.f32.mrf.mxu1 }
 0xd18   : > { %v1672_v29 = vadd.f32 %v1666_v28, %v1622_v27 }
 0xd19   : > { %v2071_v6 = vpop.f32.mrf.mxu1 }
 0xd1a   : > { %1673 = vst.msk [vmem:[#allocation2] sm:$0xff] %vm447_vm3, %v1672_v29 }
 0xd1b   : > { %v1669_v12 = vpop.f32.mrf.mxu1 }
 0xd1d   : > { %v2072_v30 = vpop.f32.mrf.mxu1 }
 0xd21   : > { %v1674_v31 = vld [vmem:[#allocation2] sm:$0xff] }
 0xd22   : > { %1675 = vst.msk [vmem:[%s435_s23] sm:$0xff] %vm447_vm3, %v1674_v31 }
 0xd23   : > { %2338 = shalt.err (!%p2335_p1)
}
 0xd24   : > { %s2339_s30 = scalar_lea.hbm %s2837_s25, 128  ;;  %s2343_s21 = scalar_lea.hbm %s2938_s1, 256 }
 0xd25   : > { %p2340_p4 = scmp.ne.s32.totalorder %s2837_s25, %s2339_s30  ;;  %p2344_p11 = scmp.lt.s32.totalorder %s2837_s25, %s2938_s1 }
 0xd26   : > { %p2345_p12 = scmp.lt.s32.totalorder %s2343_s21, %s2339_s30 }
 0xd27   : > { %p2341_p6 = pnand %p2340_p4, %p2939_p2 }
 0xd28   : > { %p2346_p13 = por %p2345_p12, %p2344_p11 }
 0xd29   : > { %p2342_p8 = pneg %p2341_p6 }
 0xd2b   : > { %p2347_p10 = pnand %p2346_p13, %p2342_p8 }
 0xd2d   : > { %2350 = shalt.err (!%p2347_p10)
}
 0xd2e   : > { %2087 = dma.vmem_to_hbm [thread:$0]  (%p2939_p2), %s1692_s26, 128, %s2837_s25, %s1677_s4  }
 0xd2f PF: > { %s2940_s14 = sld [smem:[#allocation17_spill]] }
 0xd30   : > { %s2941_s15 = sld [smem:[#allocation21_spill]] }
 0xd31   : > { %s2942_s17 = sld [smem:[#allocation20_spill]] }
 0xd35   : > { %s1703_s13 = sand.u32 1, %s2940_s14  }
 0xd36   : > { %p2943_p3 = scmp.ne.s32.totalorder %s2941_s15, 0  ;;  %s1704_s11 = scalar_lea.sflag [#allocation5], %s1703_s13 }
 0xd37   : > { %p2944_p7 = scmp.ge.s32.totalorder %s2942_s17, 2 }
 0xd39   : > { %p2107_p9 = pnand %p2944_p7, %p2943_p3 }
 0xd3b   : > { %p2108_p0 = pneg %p2107_p9 }
 0xd3d   : > { %2388 = dma.done.wait (%p2108_p0), %s1704_s11, 128  }
 0xd3e   : > { %2390 = vsyncadd (%p2108_p0), %s1704_s11, 4294967168  ;;  %s28_s10 = sadd.s32 1, %s2942_s17   ;;  %s2945_s20 = sld [smem:[#allocation24_spill]] }
 0xd3f   : > { %p25_p5 = scmp.ge.s32.totalorder %s28_s10, 4   ;;  %s2946_s30 = sld [smem:[#allocation19_spill]] }
 0xd40   : > { %s2947_s9 = sld [smem:[#allocation22_spill]]  ;;  %s2948_s27 = smov %s2397_s28 }
 0xd41   : > { %s2949_s28 = smov %s2401_s29  ;;  %27 = sbr.rel (!%p25_p5) target bundleno = 14 (0xe), region = 132 }
 0xd44   : > { %s2950_s29 = smov %s2945_s20 }
 0xd46   :  { %1709 = vsyncpa [#allocation4], 1 }
 0xd47   :  { %1711 = vsyncpa [#allocation4 + $0x1], 1 }
 0xd48   :  { %1712 = vsyncpa [#allocation7], 1 }
 0xd49   :  { %1714 = vsyncpa [#allocation7 + $0x1], 1 }
 0xd4a   :  { %1715 = vsyncpa [#allocation10], 1 }
 0xd4b   :  { %1716 = vsyncpa [#allocation5], 1 }
 0xd4c   :  { %1718 = vsyncpa [#allocation5 + $0x1], 1 }

</bundles_post_ra>
